<compile_context>
chip_gen: v5e
topology: v5e:2x2
jax: 0.10.0
libtpu: 0.0.40
codegen_flags: <defaults>
</compile_context>

<pallas_src>
import math
import functools

import jax
import jax.numpy as jnp
from jax.experimental import pallas as pl
from jax.experimental.pallas import tpu as pltpu


# Finite "-inf" so the online softmax never produces NaNs on masked entries
# (exp(MASK - m) underflows cleanly to 0).
DEFAULT_MASK_VALUE = -1e30

# Explicit scoped-VMEM budget (review: raise above the 16/32 MiB defaults when
# tiles grow; kept < 64 MiB so it is also valid on v7x).
VMEM_LIMIT_BYTES = 48 * 1024 * 1024

LANES = 128


def _sublane_granule(dtype):
    """Second-minor tiling granule for a dtype (8 f32 / 16 bf16 / 32 int8)."""
    return max(8, 32 // jnp.dtype(dtype).itemsize)


def _pick_tile(dim, target, granule=8):
    """Largest tile <= target that divides dim, preferring granule multiples.

    Review fix: no longer falls back to the full dimension when
    dim % target != 0 (which could allocate a (T, T) score tile or violate
    the (8,128) tiling rule)."""
    if dim <= target:
        return dim
    top = (target // granule) * granule
    for cand in range(top, 0, -granule):
        if dim % cand == 0:
            return cand
    for cand in range(min(target, dim), 0, -1):
        if dim % cand == 0:
            return cand
    return dim


# ---------------------- tiled linear: y = x @ W_kn -----------------------
# W is stored (K, N): the transpose from the PyTorch (N, K) layout is done
# once at parameter-prep time (prepare_params), not per call.

def _linear_kernel(x_ref, w_ref, o_ref, acc_ref):
    @pl.when(pl.program_id(2) == 0)
    def _():
        acc_ref[...] = jnp.zeros(acc_ref.shape, acc_ref.dtype)

    # Standard contraction against a natively-laid-out (tk, tn) RHS.
    acc_ref[...] += jnp.dot(x_ref[...], w_ref[...],
                            preferred_element_type=jnp.float32)

    @pl.when(pl.program_id(2) == pl.num_programs(2) - 1)
    def _():
        o_ref[...] = acc_ref[...].astype(o_ref.dtype)


def pallas_linear(x, w_kn, *, tm=512, tn=512, tk=512):
    """x: (M, K); w_kn: (K, N) (pre-transposed once). Returns x @ w_kn -> (M, N)."""
    M, K = x.shape
    K2, N = w_kn.shape
    assert K == K2
    tm = _pick_tile(M, tm, _sublane_granule(x.dtype))
    tn = _pick_tile(N, tn, 128)
    tk = _pick_tile(K, tk, 128)
    grid = (M // tm, N // tn, K // tk)
    return pl.pallas_call(
        _linear_kernel,
        out_shape=jax.ShapeDtypeStruct((M, N), x.dtype),
        grid_spec=pltpu.PrefetchScalarGridSpec(
            num_scalar_prefetch=0,
            grid=grid,
            in_specs=[
                pl.BlockSpec((tm, tk), lambda i, j, k: (i, k)),
                pl.BlockSpec((tk, tn), lambda i, j, k: (k, j)),
            ],
            out_specs=pl.BlockSpec((tm, tn), lambda i, j, k: (i, j)),
            scratch_shapes=[pltpu.VMEM((tm, tn), jnp.float32)],
        ),
        compiler_params=pltpu.CompilerParams(
            dimension_semantics=("parallel", "parallel", "arbitrary"),
            vmem_limit_bytes=VMEM_LIMIT_BYTES),
    )(x, w_kn)


# ------------- flash attention with fused RoPE (causal, no mask array) -------

def _flash_attn_kernel(q_ref, k_ref, v_ref, cq_ref, sq_ref, ck_ref, sk_ref,
                       o_ref, m_ref, l_ref, acc_ref, qrot_ref, *, scale):
    qi = pl.program_id(2)
    ki = pl.program_id(3)

    tq, hs = q_ref.shape
    tk = k_ref.shape[0]
    half = hs // 2

    def rep_lanes(x, n):
        # x: (rows, 128), lane-replicated -> (rows, n)
        lanes = x.shape[-1]
        if n == lanes:
            return x
        if n < lanes:
            return x[:, :n]
        assert n % lanes == 0
        return jnp.tile(x, (1, n // lanes))

    def rope(block, cos, sin_signed):
        # Rotate-halves RoPE (valid because q/k head dims were de-interleaved
        # at parameter-prep time): x*cos + roll(x, hs/2)*[-sin, +sin].
        xf = block.astype(jnp.float32)
        return xf * cos + pltpu.roll(xf, half, axis=1) * sin_signed

    @pl.when(ki == 0)
    def _():
        m_ref[...] = jnp.full(m_ref.shape, DEFAULT_MASK_VALUE, m_ref.dtype)
        l_ref[...] = jnp.zeros(l_ref.shape, l_ref.dtype)
        acc_ref[...] = jnp.zeros(acc_ref.shape, acc_ref.dtype)
        # RoPE-rotate the q block once per (b, h, qi); fold in 1/sqrt(hs) so
        # it is not recomputed every ki step.
        qrot = rope(q_ref[...], cq_ref[...], sq_ref[...]) * scale
        qrot_ref[...] = qrot.astype(qrot_ref.dtype)

    def update(apply_mask):
        # RoPE-rotate the k block (cheap VPU/XLU work vs. an HBM round trip).
        k_rot = rope(k_ref[...], ck_ref[...], sk_ref[...]).astype(k_ref.dtype)
        # s = q @ k^T (contract both head dims; no explicit transpose).
        s = jax.lax.dot_general(
            qrot_ref[...], k_rot,
            dimension_numbers=(((1,), (1,)), ((), ())),
            preferred_element_type=jnp.float32)                  # (tq, tk) f32
        if apply_mask:
            # Diagonal block only (tq == tk, blocks diagonally aligned), so a
            # block-local iota suffices; non-diagonal blocks skip these VPU ops.
            rows = jax.lax.broadcasted_iota(jnp.int32, (tq, tk), 0)
            cols = jax.lax.broadcasted_iota(jnp.int32, (tq, tk), 1)
            s = jnp.where(rows >= cols, s, DEFAULT_MASK_VALUE)

        # Online softmax with lane-replicated (tq, 128) stats.
        m_prev = m_ref[...]
        m_new = jnp.maximum(m_prev, jnp.max(s, axis=-1, keepdims=True))
        alpha = jnp.exp(m_prev - m_new)
        p = jnp.exp(s - rep_lanes(m_new, tk))
        l_ref[...] = alpha * l_ref[...] + jnp.sum(p, axis=-1, keepdims=True)
        acc_ref[...] = rep_lanes(alpha, hs) * acc_ref[...] + jnp.dot(
            p.astype(v_ref.dtype), v_ref[...],
            preferred_element_type=jnp.float32)
        m_ref[...] = m_new

    @pl.when(ki < qi)          # fully-unmasked lower-triangle block
    def _():
        update(apply_mask=False)

    @pl.when(ki == qi)         # diagonal block
    def _():
        update(apply_mask=True)

    @pl.when(ki == pl.num_programs(3) - 1)
    def _():
        inv_l = pl.reciprocal(l_ref[...], approx=False)
        o_ref[...] = (acc_ref[...] * rep_lanes(inv_l, hs)).astype(o_ref.dtype)


def pallas_attention(qkv, cos, sin_signed, *, n_heads, scale,
                     block_q=512, block_k=512):
    """Causal flash attention with fused RoPE.

    qkv: (B, T, 3C) fused projection output (q | k | v along the lane axis,
         q/k head dims de-interleaved at parameter-prep time).
    cos, sin_signed: (T, hs) f32 rotate-halves RoPE tables.
    Returns (B, T, C) attention output, heads packed along C.
    """
    B, T, C3 = qkv.shape
    assert C3 % 3 == 0
    C = C3 // 3
    assert C % n_heads == 0
    hs = C // n_heads
    assert hs % 128 == 0, "head_size must be lane-dense (multiple of 128)"

    blk = _pick_tile(T, min(block_q, block_k), _sublane_granule(qkv.dtype))
    tq = tk = blk
    grid = (B, n_heads, T // tq, T // tk)

    # The same qkv array is passed three times (q/k/v) -- per-head slicing is
    # done along the lane axis by the index_maps, so no jnp.split HBM copy.
    # K/V (and their rope tables) clamp ki to qi so that upper-triangle steps
    # repeat the previous block index and their DMAs are elided.
    q_map = lambda b, h, qi, ki: (b, qi, h)
    k_map = lambda b, h, qi, ki: (b, jnp.minimum(ki, qi), n_heads + h)
    v_map = lambda b, h, qi, ki: (b, jnp.minimum(ki, qi), 2 * n_heads + h)
    rq_map = lambda b, h, qi, ki: (qi, 0)
    rk_map = lambda b, h, qi, ki: (jnp.minimum(ki, qi), 0)

    kern = functools.partial(_flash_attn_kernel, scale=scale)
    return pl.pallas_call(
        kern,
        out_shape=jax.ShapeDtypeStruct((B, T, C), qkv.dtype),
        grid_spec=pltpu.PrefetchScalarGridSpec(
            num_scalar_prefetch=0,
            grid=grid,
            in_specs=[
                pl.BlockSpec((None, tq, hs), q_map),
                pl.BlockSpec((None, tk, hs), k_map),
                pl.BlockSpec((None, tk, hs), v_map),
                pl.BlockSpec((tq, hs), rq_map),   # cos for q rows
                pl.BlockSpec((tq, hs), rq_map),   # sin for q rows
                pl.BlockSpec((tk, hs), rk_map),   # cos for k rows
                pl.BlockSpec((tk, hs), rk_map),   # sin for k rows
            ],
            out_specs=pl.BlockSpec((None, tq, hs), q_map),
            scratch_shapes=[
                pltpu.VMEM((tq, LANES), jnp.float32),  # m (lane-replicated)
                pltpu.VMEM((tq, LANES), jnp.float32),  # l (lane-replicated)
                pltpu.VMEM((tq, hs), jnp.float32),     # acc
                pltpu.VMEM((tq, hs), qkv.dtype),       # rotated + scaled q
            ],
        ),
        compiler_params=pltpu.CompilerParams(
            dimension_semantics=("parallel", "parallel", "parallel", "arbitrary"),
            vmem_limit_bytes=VMEM_LIMIT_BYTES),
    )(qkv, qkv, qkv, cos, sin_signed, cos, sin_signed)
    # TODO(synk): optionally process 2 heads per grid step on v6e/v7x to fill
    # the 256-deep MXU (hs=128 only half-fills it); left out for simplicity.


# ----------------------------- parameter / table prep ------------------------

def build_rope_cache(seq_len, n_elem, base=10000.0):
    # matches lit-llama's build_rope_cache: (T, n_elem//2, 2) with (cos, sin)
    theta = 1.0 / (base ** (jnp.arange(0, n_elem, 2, dtype=jnp.float32) / n_elem))
    seq_idx = jnp.arange(seq_len, dtype=jnp.float32)
    idx_theta = jnp.outer(seq_idx, theta)
    return jnp.stack([jnp.cos(idx_theta), jnp.sin(idx_theta)], axis=-1)


def prepare_rope_tables(rope_cache):
    """(T, hs//2, 2) interleaved cache -> rotate-halves tables (T, hs) f32."""
    cos = rope_cache[..., 0]
    sin = rope_cache[..., 1]
    cos_full = jnp.concatenate([cos, cos], axis=-1).astype(jnp.float32)
    sin_signed = jnp.concatenate([-sin, sin], axis=-1).astype(jnp.float32)
    return cos_full, sin_signed


def prepare_params(w_attn, w_proj, n_heads):
    """One-time parameter prep (outside the per-call path).

    * De-interleave the q/k head dims of c_attn (even dims first, then odd)
      so in-kernel RoPE becomes a rotate-halves op; attention scores are
      invariant to this shared permutation of q/k head dims and v is
      untouched, so the module output is unchanged.
    * Transpose both weights from the PyTorch (N, K) layout to (K, N) so the
      linear kernel contracts against a natively-laid-out RHS.
    """
    C3, C = w_attn.shape
    assert C3 == 3 * C and C % n_heads == 0
    hs = C // n_heads
    within = jnp.concatenate([jnp.arange(0, hs, 2), jnp.arange(1, hs, 2)])
    perm = (jnp.arange(n_heads)[:, None] * hs + within[None, :]).reshape(-1)
    wq, wk, wv = jnp.split(w_attn, 3, axis=0)
    w_attn_p = jnp.concatenate([wq[perm], wk[perm], wv], axis=0)
    return w_attn_p.T, w_proj.T       # (C, 3C), (C, C)


# ----------------------------- forward pass ----------------------------------

@functools.partial(jax.jit, static_argnames=("n_heads",))
def causal_self_attention(x, cos, sin_signed, mask, w_attn_t, w_proj_t, *,
                          n_heads):
    """Forward pass of CausalSelfAttention (kv_cache=None, learning_block off).

    x: (B, T, C).  w_attn_t: (C, 3C), w_proj_t: (C, C) -- outputs of
    prepare_params.  `mask` (the causal MaskCache) is accepted for signature
    parity but the causal structure is generated in-kernel, so it is not read.
    Returns (y, kv_cache=None).
    """
    del mask  # causal mask is built inside the flash-attention kernel
    B, T, C = x.shape
    hs = C // n_heads

    # Fused qkv projection; q/k/v stay packed in one (B, T, 3C) array (no
    # split copy) and RoPE + scaling happen inside the attention kernel.
    qkv = pallas_linear(x.reshape(B * T, C), w_attn_t).reshape(B, T, 3 * C)

    y = pallas_attention(qkv, cos, sin_signed,
                         n_heads=n_heads, scale=1.0 / math.sqrt(hs))

    y = pallas_linear(y.reshape(B * T, C), w_proj_t).reshape(B, T, C)

    # TODO(synk): kv_cache / input_pos decode path (index_copy + roll) and the
    # learning_block branch are not implemented (defaults: kv_cache=None,
    # learning_block=False).
    return y, None


# ----------------------------- pure-JAX reference ----------------------------

def reference_forward(x, rope_cache, w_attn, w_proj, n_heads):
    """f32 mirror of the PyTorch module (interleaved RoPE, dense causal softmax)."""
    B, T, C = x.shape
    hs = C // n_heads
    xf = x.astype(jnp.float32)
    qkv = xf @ w_attn.astype(jnp.float32).T
    q, k, v = jnp.split(qkv, 3, axis=-1)
    q = q.reshape(B, T, n_heads, hs)
    k = k.reshape(B, T, n_heads, hs)
    v = v.reshape(B, T, n_heads, hs)

    def rope_ref(xh):
        xs = xh.reshape(B, T, n_heads, hs // 2, 2)
        rc = rope_cache[:T].reshape(1, T, 1, hs // 2, 2)
        out = jnp.stack(
            [xs[..., 0] * rc[..., 0] - xs[..., 1] * rc[..., 1],
             xs[..., 1] * rc[..., 0] + xs[..., 0] * rc[..., 1]], axis=-1)
        return out.reshape(B, T, n_heads, hs)

    q = jnp.transpose(rope_ref(q), (0, 2, 1, 3))
    k = jnp.transpose(rope_ref(k), (0, 2, 1, 3))
    v = jnp.transpose(v, (0, 2, 1, 3))
    att = jnp.einsum("bhqd,bhkd->bhqk", q, k) / math.sqrt(hs)
    causal = jnp.tril(jnp.ones((T, T), dtype=bool))
    att = jnp.where(causal, att, DEFAULT_MASK_VALUE)
    att = jax.nn.softmax(att, axis=-1)
    y = jnp.einsum("bhqk,bhkd->bhqd", att, v)
    y = jnp.transpose(y, (0, 2, 1, 3)).reshape(B, T, C)
    return y @ w_proj.astype(jnp.float32).T


# ----------------------------- main ------------------------------------------

if __name__ == "__main__":
    # Small but kernel-friendly shapes: head_size = 128 keeps every block
    # lane-dense and (8/16, 128)-compliant (LLaMA itself uses head_size = 128).
    B, T, n_heads, head_size = 2, 16, 2, 128
    C = n_heads * head_size  # 256
    dtype = jnp.bfloat16     # bf16 matmuls (f32 MXU accumulation / softmax)

    key = jax.random.PRNGKey(0)
    k1, k2, k3 = jax.random.split(key, 3)

    x = jax.random.normal(k1, (B, T, C), dtype=jnp.float32).astype(dtype)
    # Deterministic synthetic weights in PyTorch nn.Linear layout (out, in).
    w_attn = (0.02 * jax.random.normal(k2, (3 * C, C), jnp.float32)).astype(dtype)
    w_proj = (0.02 * jax.random.normal(k3, (C, C), jnp.float32)).astype(dtype)

    rope = build_rope_cache(T, head_size)              # (T, hs//2, 2) f32
    cos_t, sin_t = prepare_rope_tables(rope)           # (T, hs) f32 each
    w_attn_t, w_proj_t = prepare_params(w_attn, w_proj, n_heads)  # one-time prep
    mask = jnp.tril(jnp.ones((T, T), dtype=bool))      # causal MaskCache (unused)

    y, kv = causal_self_attention(x, cos_t, sin_t, mask, w_attn_t, w_proj_t,
                                  n_heads=n_heads)
    jax.block_until_ready(y)

    assert y.shape == (B, T, C)
    y32 = y.astype(jnp.float32)
    assert bool(jnp.all(jnp.isfinite(y32)))

    # Loose parity check against the PyTorch-equivalent f32 reference
    # (bf16 MXU rounding accounts for the tolerance).
    y_ref = reference_forward(x, rope, w_attn, w_proj, n_heads)
    max_err = float(jnp.max(jnp.abs(y32 - y_ref)))
    assert max_err < 2e-2, f"max abs error vs reference: {max_err}"

    print("KERNEL_OK")
</pallas_src>

<mosaic_0001>
module attributes {stable_mosaic.version = 11 : i64} {
  func.func @_linear_kernel(%arg0: i32, %arg1: i32, %arg2: i32, %arg3: memref<32x256xbf16, #tpu.memory_space<vmem>>, %arg4: memref<256x256xbf16, #tpu.memory_space<vmem>>, %arg5: memref<32x256xbf16, #tpu.memory_space<vmem>>, %arg6: memref<32x256xf32, #tpu.memory_space<vmem>>) attributes {dimension_semantics = [#tpu.dimension_semantics<parallel>, #tpu.dimension_semantics<parallel>, #tpu.dimension_semantics<arbitrary>], iteration_bounds = array<i64: 1, 1, 1>, scalar_prefetch = 0 : i64, scratch_operands = 1 : i64, tpu.core_type = #tpu.core_type<tc>, window_params = [{transform_indices = @transform_0, window_bounds = array<i64: 32, 256>}, {transform_indices = @transform_1, window_bounds = array<i64: 256, 256>}, {transform_indices = @transform_2, window_bounds = array<i64: 32, 256>}]} {
    %c0_i32 = arith.constant 0 : i32
    %0 = arith.cmpi eq, %arg2, %c0_i32 : i32
    %1 = arith.extui %0 : i1 to i32
    %c0_i32_0 = arith.constant 0 : i32
    %2 = arith.cmpi ne, %1, %c0_i32_0 : i32
    scf.if %2 {
      %cst_10 = arith.constant 0.000000e+00 : f32
      %12 = vector.broadcast %cst_10 : f32 to vector<32x256xf32>
      %c0_11 = arith.constant 0 : index
      %c0_12 = arith.constant 0 : index
      %13 = vector.load %arg6[%c0_11, %c0_12] : memref<32x256xf32, #tpu.memory_space<vmem>>, vector<32x256xf32>
      tpu.vector_store %arg6[%c0_11, %c0_12], %12 {strides = array<i32>} : memref<32x256xf32, #tpu.memory_space<vmem>>, vector<32x256xf32>,
    } else {
    }
    %c0 = arith.constant 0 : index
    %c0_1 = arith.constant 0 : index
    %3 = vector.load %arg6[%c0, %c0_1] : memref<32x256xf32, #tpu.memory_space<vmem>>, vector<32x256xf32>
    %c0_2 = arith.constant 0 : index
    %c0_3 = arith.constant 0 : index
    %4 = vector.load %arg3[%c0_2, %c0_3] : memref<32x256xbf16, #tpu.memory_space<vmem>>, vector<32x256xbf16>
    %c0_4 = arith.constant 0 : index
    %c0_5 = arith.constant 0 : index
    %5 = vector.load %arg4[%c0_4, %c0_5] : memref<256x256xbf16, #tpu.memory_space<vmem>>, vector<256x256xbf16>
    %cst = arith.constant dense<0.000000e+00> : vector<32x256xf32>
    %6 = tpu.matmul %4, %5, %cst {dimension_numbers = #tpu.dot_dimension_numbers<[1], [0], [0], [1], [0, 0, 1, 1], [], []>} : vector<32x256xbf16>, vector<256x256xbf16>, vector<32x256xf32> -> vector<32x256xf32>
    %7 = arith.addf %3, %6 : vector<32x256xf32>
    %c0_6 = arith.constant 0 : index
    %c0_7 = arith.constant 0 : index
    %8 = vector.load %arg6[%c0_6, %c0_7] : memref<32x256xf32, #tpu.memory_space<vmem>>, vector<32x256xf32>
    tpu.vector_store %arg6[%c0_6, %c0_7], %7 {strides = array<i32>} : memref<32x256xf32, #tpu.memory_space<vmem>>, vector<32x256xf32>,
    %c0_i32_8 = arith.constant 0 : i32
    %9 = arith.cmpi eq, %arg2, %c0_i32_8 : i32
    %10 = arith.extui %9 : i1 to i32
    %c0_i32_9 = arith.constant 0 : i32
    %11 = arith.cmpi ne, %10, %c0_i32_9 : i32
    scf.if %11 {
      %c0_10 = arith.constant 0 : index
      %c0_11 = arith.constant 0 : index
      %12 = vector.load %arg6[%c0_10, %c0_11] : memref<32x256xf32, #tpu.memory_space<vmem>>, vector<32x256xf32>
      %13 = arith.truncf %12 : vector<32x256xf32> to vector<32x256xbf16>
      %c0_12 = arith.constant 0 : index
      %c0_13 = arith.constant 0 : index
      %14 = vector.load %arg5[%c0_12, %c0_13] : memref<32x256xbf16, #tpu.memory_space<vmem>>, vector<32x256xbf16>
      tpu.vector_store %arg5[%c0_12, %c0_13], %13 {strides = array<i32>} : memref<32x256xbf16, #tpu.memory_space<vmem>>, vector<32x256xbf16>,
    } else {
    }
    return
  }
  func.func @transform_0(%arg0: i32, %arg1: i32, %arg2: i32) -> (i32, i32) {
    %c0_i32 = arith.constant 0 : i32
    return %arg0, %arg2 : i32, i32
  }
  func.func @transform_1(%arg0: i32, %arg1: i32, %arg2: i32) -> (i32, i32) {
    %c0_i32 = arith.constant 0 : i32
    return %arg2, %arg1 : i32, i32
  }
  func.func @transform_2(%arg0: i32, %arg1: i32, %arg2: i32) -> (i32, i32) {
    %c0_i32 = arith.constant 0 : i32
    return %arg0, %arg1 : i32, i32
  }
}

module attributes {stable_mosaic.version = 11 : i64} {
  func.func @_linear_kernel(%arg0: i32, %arg1: i32, %arg2: i32, %arg3: memref<32x256xbf16, #tpu.memory_space<vmem>>, %arg4: memref<256x384xbf16, #tpu.memory_space<vmem>>, %arg5: memref<32x384xbf16, #tpu.memory_space<vmem>>, %arg6: memref<32x384xf32, #tpu.memory_space<vmem>>) attributes {dimension_semantics = [#tpu.dimension_semantics<parallel>, #tpu.dimension_semantics<parallel>, #tpu.dimension_semantics<arbitrary>], iteration_bounds = array<i64: 1, 2, 1>, scalar_prefetch = 0 : i64, scratch_operands = 1 : i64, tpu.core_type = #tpu.core_type<tc>, window_params = [{transform_indices = @transform_0, window_bounds = array<i64: 32, 256>}, {transform_indices = @transform_1, window_bounds = array<i64: 256, 384>}, {transform_indices = @transform_2, window_bounds = array<i64: 32, 384>}]} {
    %c0_i32 = arith.constant 0 : i32
    %0 = arith.cmpi eq, %arg2, %c0_i32 : i32
    %1 = arith.extui %0 : i1 to i32
    %c0_i32_0 = arith.constant 0 : i32
    %2 = arith.cmpi ne, %1, %c0_i32_0 : i32
    scf.if %2 {
      %cst_10 = arith.constant 0.000000e+00 : f32
      %12 = vector.broadcast %cst_10 : f32 to vector<32x384xf32>
      %c0_11 = arith.constant 0 : index
      %c0_12 = arith.constant 0 : index
      %13 = vector.load %arg6[%c0_11, %c0_12] : memref<32x384xf32, #tpu.memory_space<vmem>>, vector<32x384xf32>
      tpu.vector_store %arg6[%c0_11, %c0_12], %12 {strides = array<i32>} : memref<32x384xf32, #tpu.memory_space<vmem>>, vector<32x384xf32>,
    } else {
    }
    %c0 = arith.constant 0 : index
    %c0_1 = arith.constant 0 : index
    %3 = vector.load %arg6[%c0, %c0_1] : memref<32x384xf32, #tpu.memory_space<vmem>>, vector<32x384xf32>
    %c0_2 = arith.constant 0 : index
    %c0_3 = arith.constant 0 : index
    %4 = vector.load %arg3[%c0_2, %c0_3] : memref<32x256xbf16, #tpu.memory_space<vmem>>, vector<32x256xbf16>
    %c0_4 = arith.constant 0 : index
    %c0_5 = arith.constant 0 : index
    %5 = vector.load %arg4[%c0_4, %c0_5] : memref<256x384xbf16, #tpu.memory_space<vmem>>, vector<256x384xbf16>
    %cst = arith.constant dense<0.000000e+00> : vector<32x384xf32>
    %6 = tpu.matmul %4, %5, %cst {dimension_numbers = #tpu.dot_dimension_numbers<[1], [0], [0], [1], [0, 0, 1, 1], [], []>} : vector<32x256xbf16>, vector<256x384xbf16>, vector<32x384xf32> -> vector<32x384xf32>
    %7 = arith.addf %3, %6 : vector<32x384xf32>
    %c0_6 = arith.constant 0 : index
    %c0_7 = arith.constant 0 : index
    %8 = vector.load %arg6[%c0_6, %c0_7] : memref<32x384xf32, #tpu.memory_space<vmem>>, vector<32x384xf32>
    tpu.vector_store %arg6[%c0_6, %c0_7], %7 {strides = array<i32>} : memref<32x384xf32, #tpu.memory_space<vmem>>, vector<32x384xf32>,
    %c0_i32_8 = arith.constant 0 : i32
    %9 = arith.cmpi eq, %arg2, %c0_i32_8 : i32
    %10 = arith.extui %9 : i1 to i32
    %c0_i32_9 = arith.constant 0 : i32
    %11 = arith.cmpi ne, %10, %c0_i32_9 : i32
    scf.if %11 {
      %c0_10 = arith.constant 0 : index
      %c0_11 = arith.constant 0 : index
      %12 = vector.load %arg6[%c0_10, %c0_11] : memref<32x384xf32, #tpu.memory_space<vmem>>, vector<32x384xf32>
      %13 = arith.truncf %12 : vector<32x384xf32> to vector<32x384xbf16>
      %c0_12 = arith.constant 0 : index
      %c0_13 = arith.constant 0 : index
      %14 = vector.load %arg5[%c0_12, %c0_13] : memref<32x384xbf16, #tpu.memory_space<vmem>>, vector<32x384xbf16>
      tpu.vector_store %arg5[%c0_12, %c0_13], %13 {strides = array<i32>} : memref<32x384xbf16, #tpu.memory_space<vmem>>, vector<32x384xbf16>,
    } else {
    }
    return
  }
  func.func @transform_0(%arg0: i32, %arg1: i32, %arg2: i32) -> (i32, i32) {
    %c0_i32 = arith.constant 0 : i32
    return %arg0, %arg2 : i32, i32
  }
  func.func @transform_1(%arg0: i32, %arg1: i32, %arg2: i32) -> (i32, i32) {
    %c0_i32 = arith.constant 0 : i32
    return %arg2, %arg1 : i32, i32
  }
  func.func @transform_2(%arg0: i32, %arg1: i32, %arg2: i32) -> (i32, i32) {
    %c0_i32 = arith.constant 0 : i32
    return %arg0, %arg1 : i32, i32
  }
}

module attributes {stable_mosaic.version = 11 : i64} {
  func.func @_flash_attn_kernel(%arg0: i32, %arg1: i32, %arg2: i32, %arg3: i32, %arg4: memref<1x16x128xbf16, #tpu.memory_space<vmem>>, %arg5: memref<1x16x128xbf16, #tpu.memory_space<vmem>>, %arg6: memref<1x16x128xbf16, #tpu.memory_space<vmem>>, %arg7: memref<16x128xf32, #tpu.memory_space<vmem>>, %arg8: memref<16x128xf32, #tpu.memory_space<vmem>>, %arg9: memref<16x128xf32, #tpu.memory_space<vmem>>, %arg10: memref<16x128xf32, #tpu.memory_space<vmem>>, %arg11: memref<1x16x128xbf16, #tpu.memory_space<vmem>>, %arg12: memref<16x128xf32, #tpu.memory_space<vmem>>, %arg13: memref<16x128xf32, #tpu.memory_space<vmem>>, %arg14: memref<16x128xf32, #tpu.memory_space<vmem>>, %arg15: memref<16x128xbf16, #tpu.memory_space<vmem>>) attributes {dimension_semantics = [#tpu.dimension_semantics<parallel>, #tpu.dimension_semantics<parallel>, #tpu.dimension_semantics<parallel>, #tpu.dimension_semantics<arbitrary>], iteration_bounds = array<i64: 2, 2, 1, 1>, scalar_prefetch = 0 : i64, scratch_operands = 4 : i64, tpu.core_type = #tpu.core_type<tc>, window_params = [{transform_indices = @transform_0, window_bounds = array<i64: 1, 16, 128>}, {transform_indices = @transform_1, window_bounds = array<i64: 1, 16, 128>}, {transform_indices = @transform_2, window_bounds = array<i64: 1, 16, 128>}, {transform_indices = @transform_3, window_bounds = array<i64: 16, 128>}, {transform_indices = @transform_4, window_bounds = array<i64: 16, 128>}, {transform_indices = @transform_5, window_bounds = array<i64: 16, 128>}, {transform_indices = @transform_6, window_bounds = array<i64: 16, 128>}, {transform_indices = @transform_7, window_bounds = array<i64: 1, 16, 128>}]} {
    %c0_i32 = arith.constant 0 : i32
    %0 = arith.cmpi eq, %arg3, %c0_i32 : i32
    %1 = arith.extui %0 : i1 to i32
    %c0_i32_0 = arith.constant 0 : i32
    %2 = arith.cmpi ne, %1, %c0_i32_0 : i32
    scf.if %2 {
      %cst = arith.constant -1.000000e+30 : f32
      %12 = vector.broadcast %cst : f32 to vector<16x128xf32>
      %c0 = arith.constant 0 : index
      %c0_5 = arith.constant 0 : index
      %13 = vector.load %arg12[%c0, %c0_5] : memref<16x128xf32, #tpu.memory_space<vmem>>, vector<16x128xf32>
      tpu.vector_store %arg12[%c0, %c0_5], %12 {strides = array<i32>} : memref<16x128xf32, #tpu.memory_space<vmem>>, vector<16x128xf32>,
      %cst_6 = arith.constant 0.000000e+00 : f32
      %14 = vector.broadcast %cst_6 : f32 to vector<16x128xf32>
      %c0_7 = arith.constant 0 : index
      %c0_8 = arith.constant 0 : index
      %15 = vector.load %arg13[%c0_7, %c0_8] : memref<16x128xf32, #tpu.memory_space<vmem>>, vector<16x128xf32>
      tpu.vector_store %arg13[%c0_7, %c0_8], %14 {strides = array<i32>} : memref<16x128xf32, #tpu.memory_space<vmem>>, vector<16x128xf32>,
      %cst_9 = arith.constant 0.000000e+00 : f32
      %16 = vector.broadcast %cst_9 : f32 to vector<16x128xf32>
      %c0_10 = arith.constant 0 : index
      %c0_11 = arith.constant 0 : index
      %17 = vector.load %arg14[%c0_10, %c0_11] : memref<16x128xf32, #tpu.memory_space<vmem>>, vector<16x128xf32>
      tpu.vector_store %arg14[%c0_10, %c0_11], %16 {strides = array<i32>} : memref<16x128xf32, #tpu.memory_space<vmem>>, vector<16x128xf32>,
      %c0_12 = arith.constant 0 : index
      %c0_13 = arith.constant 0 : index
      %c0_14 = arith.constant 0 : index
      %18 = vector.load %arg4[%c0_12, %c0_13, %c0_14] : memref<1x16x128xbf16, #tpu.memory_space<vmem>>, vector<1x16x128xbf16>
      %19 = vector.shape_cast %18 : vector<1x16x128xbf16> to vector<16x128xbf16>
      %c0_15 = arith.constant 0 : index
      %c0_16 = arith.constant 0 : index
      %20 = vector.load %arg7[%c0_15, %c0_16] : memref<16x128xf32, #tpu.memory_space<vmem>>, vector<16x128xf32>
      %c0_17 = arith.constant 0 : index
      %c0_18 = arith.constant 0 : index
      %21 = vector.load %arg8[%c0_17, %c0_18] : memref<16x128xf32, #tpu.memory_space<vmem>>, vector<16x128xf32>
      %22 = arith.extf %19 : vector<16x128xbf16> to vector<16x128xf32>
      %23 = arith.mulf %22, %20 : vector<16x128xf32>
      %c64_i32 = arith.constant 64 : i32
      %24 = tpu.dynamic_rotate %22 by %c64_i32 dim 1 : vector<16x128xf32>, i32 -> vector<16x128xf32>
      %25 = arith.mulf %24, %21 : vector<16x128xf32>
      %26 = arith.addf %23, %25 : vector<16x128xf32>
      %cst_19 = arith.constant 0.0883883461 : f32
      %27 = vector.broadcast %cst_19 : f32 to vector<16x128xf32>
      %28 = arith.mulf %26, %27 : vector<16x128xf32>
      %29 = arith.truncf %28 : vector<16x128xf32> to vector<16x128xbf16>
      %c0_20 = arith.constant 0 : index
      %c0_21 = arith.constant 0 : index
      %30 = vector.load %arg15[%c0_20, %c0_21] : memref<16x128xbf16, #tpu.memory_space<vmem>>, vector<16x128xbf16>
      tpu.vector_store %arg15[%c0_20, %c0_21], %29 {strides = array<i32>} : memref<16x128xbf16, #tpu.memory_space<vmem>>, vector<16x128xbf16>,
    } else {
    }
    %3 = arith.cmpi slt, %arg3, %arg2 : i32
    %4 = arith.extui %3 : i1 to i32
    %c0_i32_1 = arith.constant 0 : i32
    %5 = arith.cmpi ne, %4, %c0_i32_1 : i32
    scf.if %5 {
      %c0 = arith.constant 0 : index
      %c0_5 = arith.constant 0 : index
      %c0_6 = arith.constant 0 : index
      %12 = vector.load %arg5[%c0, %c0_5, %c0_6] : memref<1x16x128xbf16, #tpu.memory_space<vmem>>, vector<1x16x128xbf16>
      %13 = vector.shape_cast %12 : vector<1x16x128xbf16> to vector<16x128xbf16>
      %c0_7 = arith.constant 0 : index
      %c0_8 = arith.constant 0 : index
      %14 = vector.load %arg9[%c0_7, %c0_8] : memref<16x128xf32, #tpu.memory_space<vmem>>, vector<16x128xf32>
      %c0_9 = arith.constant 0 : index
      %c0_10 = arith.constant 0 : index
      %15 = vector.load %arg10[%c0_9, %c0_10] : memref<16x128xf32, #tpu.memory_space<vmem>>, vector<16x128xf32>
      %16 = arith.extf %13 : vector<16x128xbf16> to vector<16x128xf32>
      %17 = arith.mulf %16, %14 : vector<16x128xf32>
      %c64_i32 = arith.constant 64 : i32
      %18 = tpu.dynamic_rotate %16 by %c64_i32 dim 1 : vector<16x128xf32>, i32 -> vector<16x128xf32>
      %19 = arith.mulf %18, %15 : vector<16x128xf32>
      %20 = arith.addf %17, %19 : vector<16x128xf32>
      %21 = arith.truncf %20 : vector<16x128xf32> to vector<16x128xbf16>
      %c0_11 = arith.constant 0 : index
      %c0_12 = arith.constant 0 : index
      %22 = vector.load %arg15[%c0_11, %c0_12] : memref<16x128xbf16, #tpu.memory_space<vmem>>, vector<16x128xbf16>
      %cst = arith.constant dense<0.000000e+00> : vector<16x16xf32>
      %23 = tpu.matmul %22, %21, %cst {dimension_numbers = #tpu.dot_dimension_numbers<[1], [1], [0], [0], [0, 0, 1, 0], [], []>} : vector<16x128xbf16>, vector<16x128xbf16>, vector<16x16xf32> -> vector<16x16xf32>
      %c0_13 = arith.constant 0 : index
      %c0_14 = arith.constant 0 : index
      %24 = vector.load %arg12[%c0_13, %c0_14] : memref<16x128xf32, #tpu.memory_space<vmem>>, vector<16x128xf32>
      %cst_15 = arith.constant dense<0xFF800000> : vector<16xf32>
      %25 = vector.multi_reduction <maximumf>, %23, %cst_15 [1] : vector<16x16xf32> to vector<16xf32>
      %26 = vector.shape_cast %25 : vector<16xf32> to vector<16x1xf32>
      %27 = vector.broadcast %26 : vector<16x1xf32> to vector<16x128xf32>
      %28 = arith.maximumf %24, %27 : vector<16x128xf32>
      %29 = arith.subf %24, %28 : vector<16x128xf32>
      %30 = math.exp %29 : vector<16x128xf32>
      %31 = vector.extract_strided_slice %28 {offsets = [0, 0], sizes = [16, 16], strides = [1, 1]} : vector<16x128xf32> to vector<16x16xf32>
      %32 = arith.subf %23, %31 : vector<16x16xf32>
      %33 = math.exp %32 : vector<16x16xf32>
      %c0_16 = arith.constant 0 : index
      %c0_17 = arith.constant 0 : index
      %34 = vector.load %arg13[%c0_16, %c0_17] : memref<16x128xf32, #tpu.memory_space<vmem>>, vector<16x128xf32>
      %35 = arith.mulf %30, %34 : vector<16x128xf32>
      %cst_18 = arith.constant dense<0.000000e+00> : vector<16xf32>
      %36 = vector.multi_reduction <add>, %33, %cst_18 [1] : vector<16x16xf32> to vector<16xf32>
      %37 = vector.shape_cast %36 : vector<16xf32> to vector<16x1xf32>
      %38 = vector.broadcast %37 : vector<16x1xf32> to vector<16x128xf32>
      %39 = arith.addf %35, %38 : vector<16x128xf32>
      %c0_19 = arith.constant 0 : index
      %c0_20 = arith.constant 0 : index
      %40 = vector.load %arg13[%c0_19, %c0_20] : memref<16x128xf32, #tpu.memory_space<vmem>>, vector<16x128xf32>
      tpu.vector_store %arg13[%c0_19, %c0_20], %39 {strides = array<i32>} : memref<16x128xf32, #tpu.memory_space<vmem>>, vector<16x128xf32>,
      %c0_21 = arith.constant 0 : index
      %c0_22 = arith.constant 0 : index
      %41 = vector.load %arg14[%c0_21, %c0_22] : memref<16x128xf32, #tpu.memory_space<vmem>>, vector<16x128xf32>
      %42 = arith.mulf %30, %41 : vector<16x128xf32>
      %43 = arith.truncf %33 : vector<16x16xf32> to vector<16x16xbf16>
      %c0_23 = arith.constant 0 : index
      %c0_24 = arith.constant 0 : index
      %c0_25 = arith.constant 0 : index
      %44 = vector.load %arg6[%c0_23, %c0_24, %c0_25] : memref<1x16x128xbf16, #tpu.memory_space<vmem>>, vector<1x16x128xbf16>
      %45 = vector.shape_cast %44 : vector<1x16x128xbf16> to vector<16x128xbf16>
      %cst_26 = arith.constant dense<0.000000e+00> : vector<16x128xf32>
      %46 = tpu.matmul %43, %45, %cst_26 {dimension_numbers = #tpu.dot_dimension_numbers<[1], [0], [0], [1], [0, 0, 1, 1], [], []>} : vector<16x16xbf16>, vector<16x128xbf16>, vector<16x128xf32> -> vector<16x128xf32>
      %47 = arith.addf %42, %46 : vector<16x128xf32>
      %c0_27 = arith.constant 0 : index
      %c0_28 = arith.constant 0 : index
      %48 = vector.load %arg14[%c0_27, %c0_28] : memref<16x128xf32, #tpu.memory_space<vmem>>, vector<16x128xf32>
      tpu.vector_store %arg14[%c0_27, %c0_28], %47 {strides = array<i32>} : memref<16x128xf32, #tpu.memory_space<vmem>>, vector<16x128xf32>,
      %c0_29 = arith.constant 0 : index
      %c0_30 = arith.constant 0 : index
      %49 = vector.load %arg12[%c0_29, %c0_30] : memref<16x128xf32, #tpu.memory_space<vmem>>, vector<16x128xf32>
      tpu.vector_store %arg12[%c0_29, %c0_30], %28 {strides = array<i32>} : memref<16x128xf32, #tpu.memory_space<vmem>>, vector<16x128xf32>,
    } else {
    }
    %6 = arith.cmpi eq, %arg3, %arg2 : i32
    %7 = arith.extui %6 : i1 to i32
    %c0_i32_2 = arith.constant 0 : i32
    %8 = arith.cmpi ne, %7, %c0_i32_2 : i32
    scf.if %8 {
      %c0 = arith.constant 0 : index
      %c0_5 = arith.constant 0 : index
      %c0_6 = arith.constant 0 : index
      %12 = vector.load %arg5[%c0, %c0_5, %c0_6] : memref<1x16x128xbf16, #tpu.memory_space<vmem>>, vector<1x16x128xbf16>
      %13 = vector.shape_cast %12 : vector<1x16x128xbf16> to vector<16x128xbf16>
      %c0_7 = arith.constant 0 : index
      %c0_8 = arith.constant 0 : index
      %14 = vector.load %arg9[%c0_7, %c0_8] : memref<16x128xf32, #tpu.memory_space<vmem>>, vector<16x128xf32>
      %c0_9 = arith.constant 0 : index
      %c0_10 = arith.constant 0 : index
      %15 = vector.load %arg10[%c0_9, %c0_10] : memref<16x128xf32, #tpu.memory_space<vmem>>, vector<16x128xf32>
      %16 = arith.extf %13 : vector<16x128xbf16> to vector<16x128xf32>
      %17 = arith.mulf %16, %14 : vector<16x128xf32>
      %c64_i32 = arith.constant 64 : i32
      %18 = tpu.dynamic_rotate %16 by %c64_i32 dim 1 : vector<16x128xf32>, i32 -> vector<16x128xf32>
      %19 = arith.mulf %18, %15 : vector<16x128xf32>
      %20 = arith.addf %17, %19 : vector<16x128xf32>
      %21 = arith.truncf %20 : vector<16x128xf32> to vector<16x128xbf16>
      %c0_11 = arith.constant 0 : index
      %c0_12 = arith.constant 0 : index
      %22 = vector.load %arg15[%c0_11, %c0_12] : memref<16x128xbf16, #tpu.memory_space<vmem>>, vector<16x128xbf16>
      %cst = arith.constant dense<0.000000e+00> : vector<16x16xf32>
      %23 = tpu.matmul %22, %21, %cst {dimension_numbers = #tpu.dot_dimension_numbers<[1], [1], [0], [0], [0, 0, 1, 0], [], []>} : vector<16x128xbf16>, vector<16x128xbf16>, vector<16x16xf32> -> vector<16x16xf32>
      %24 = tpu.iota {dimensions = array<i32: 0>} : vector<16x16xi32>
      %25 = tpu.iota {dimensions = array<i32: 1>} : vector<16x16xi32>
      %26 = arith.cmpi sge, %24, %25 : vector<16x16xi32>
      %cst_13 = arith.constant -1.000000e+30 : f32
      %27 = vector.broadcast %cst_13 : f32 to vector<16x16xf32>
      %28 = arith.select %26, %23, %27 : vector<16x16xi1>, vector<16x16xf32>
      %c0_14 = arith.constant 0 : index
      %c0_15 = arith.constant 0 : index
      %29 = vector.load %arg12[%c0_14, %c0_15] : memref<16x128xf32, #tpu.memory_space<vmem>>, vector<16x128xf32>
      %cst_16 = arith.constant dense<0xFF800000> : vector<16xf32>
      %30 = vector.multi_reduction <maximumf>, %28, %cst_16 [1] : vector<16x16xf32> to vector<16xf32>
      %31 = vector.shape_cast %30 : vector<16xf32> to vector<16x1xf32>
      %32 = vector.broadcast %31 : vector<16x1xf32> to vector<16x128xf32>
      %33 = arith.maximumf %29, %32 : vector<16x128xf32>
      %34 = arith.subf %29, %33 : vector<16x128xf32>
      %35 = math.exp %34 : vector<16x128xf32>
      %36 = vector.extract_strided_slice %33 {offsets = [0, 0], sizes = [16, 16], strides = [1, 1]} : vector<16x128xf32> to vector<16x16xf32>
      %37 = arith.subf %28, %36 : vector<16x16xf32>
      %38 = math.exp %37 : vector<16x16xf32>
      %c0_17 = arith.constant 0 : index
      %c0_18 = arith.constant 0 : index
      %39 = vector.load %arg13[%c0_17, %c0_18] : memref<16x128xf32, #tpu.memory_space<vmem>>, vector<16x128xf32>
      %40 = arith.mulf %35, %39 : vector<16x128xf32>
      %cst_19 = arith.constant dense<0.000000e+00> : vector<16xf32>
      %41 = vector.multi_reduction <add>, %38, %cst_19 [1] : vector<16x16xf32> to vector<16xf32>
      %42 = vector.shape_cast %41 : vector<16xf32> to vector<16x1xf32>
      %43 = vector.broadcast %42 : vector<16x1xf32> to vector<16x128xf32>
      %44 = arith.addf %40, %43 : vector<16x128xf32>
      %c0_20 = arith.constant 0 : index
      %c0_21 = arith.constant 0 : index
      %45 = vector.load %arg13[%c0_20, %c0_21] : memref<16x128xf32, #tpu.memory_space<vmem>>, vector<16x128xf32>
      tpu.vector_store %arg13[%c0_20, %c0_21], %44 {strides = array<i32>} : memref<16x128xf32, #tpu.memory_space<vmem>>, vector<16x128xf32>,
      %c0_22 = arith.constant 0 : index
      %c0_23 = arith.constant 0 : index
      %46 = vector.load %arg14[%c0_22, %c0_23] : memref<16x128xf32, #tpu.memory_space<vmem>>, vector<16x128xf32>
      %47 = arith.mulf %35, %46 : vector<16x128xf32>
      %48 = arith.truncf %38 : vector<16x16xf32> to vector<16x16xbf16>
      %c0_24 = arith.constant 0 : index
      %c0_25 = arith.constant 0 : index
      %c0_26 = arith.constant 0 : index
      %49 = vector.load %arg6[%c0_24, %c0_25, %c0_26] : memref<1x16x128xbf16, #tpu.memory_space<vmem>>, vector<1x16x128xbf16>
      %50 = vector.shape_cast %49 : vector<1x16x128xbf16> to vector<16x128xbf16>
      %cst_27 = arith.constant dense<0.000000e+00> : vector<16x128xf32>
      %51 = tpu.matmul %48, %50, %cst_27 {dimension_numbers = #tpu.dot_dimension_numbers<[1], [0], [0], [1], [0, 0, 1, 1], [], []>} : vector<16x16xbf16>, vector<16x128xbf16>, vector<16x128xf32> -> vector<16x128xf32>
      %52 = arith.addf %47, %51 : vector<16x128xf32>
      %c0_28 = arith.constant 0 : index
      %c0_29 = arith.constant 0 : index
      %53 = vector.load %arg14[%c0_28, %c0_29] : memref<16x128xf32, #tpu.memory_space<vmem>>, vector<16x128xf32>
      tpu.vector_store %arg14[%c0_28, %c0_29], %52 {strides = array<i32>} : memref<16x128xf32, #tpu.memory_space<vmem>>, vector<16x128xf32>,
      %c0_30 = arith.constant 0 : index
      %c0_31 = arith.constant 0 : index
      %54 = vector.load %arg12[%c0_30, %c0_31] : memref<16x128xf32, #tpu.memory_space<vmem>>, vector<16x128xf32>
      tpu.vector_store %arg12[%c0_30, %c0_31], %33 {strides = array<i32>} : memref<16x128xf32, #tpu.memory_space<vmem>>, vector<16x128xf32>,
    } else {
    }
    %c0_i32_3 = arith.constant 0 : i32
    %9 = arith.cmpi eq, %arg3, %c0_i32_3 : i32
    %10 = arith.extui %9 : i1 to i32
    %c0_i32_4 = arith.constant 0 : i32
    %11 = arith.cmpi ne, %10, %c0_i32_4 : i32
    scf.if %11 {
      %c0 = arith.constant 0 : index
      %c0_5 = arith.constant 0 : index
      %12 = vector.load %arg13[%c0, %c0_5] : memref<16x128xf32, #tpu.memory_space<vmem>>, vector<16x128xf32>
      %13 = tpu.reciprocal %12 : vector<16x128xf32> -> vector<16x128xf32>
      %c0_6 = arith.constant 0 : index
      %c0_7 = arith.constant 0 : index
      %14 = vector.load %arg14[%c0_6, %c0_7] : memref<16x128xf32, #tpu.memory_space<vmem>>, vector<16x128xf32>
      %15 = arith.mulf %14, %13 : vector<16x128xf32>
      %16 = arith.truncf %15 : vector<16x128xf32> to vector<16x128xbf16>
      %c0_8 = arith.constant 0 : index
      %c0_9 = arith.constant 0 : index
      %c0_10 = arith.constant 0 : index
      %17 = vector.load %arg11[%c0_8, %c0_9, %c0_10] : memref<1x16x128xbf16, #tpu.memory_space<vmem>>, vector<1x16x128xbf16>
      %18 = vector.shape_cast %17 : vector<1x16x128xbf16> to vector<16x128xbf16>
      %19 = vector.shape_cast %16 : vector<16x128xbf16> to vector<1x16x128xbf16>
      tpu.vector_store %arg11[%c0_8, %c0_9, %c0_10], %19 {strides = array<i32>} : memref<1x16x128xbf16, #tpu.memory_space<vmem>>, vector<1x16x128xbf16>,
    } else {
    }
    return
  }
  func.func @transform_0(%arg0: i32, %arg1: i32, %arg2: i32, %arg3: i32) -> (i32, i32, i32) {
    %c0_i32 = arith.constant 0 : i32
    return %arg0, %arg2, %arg1 : i32, i32, i32
  }
  func.func @transform_1(%arg0: i32, %arg1: i32, %arg2: i32, %arg3: i32) -> (i32, i32, i32) {
    %0 = arith.minsi %arg3, %arg2 : i32
    %c2_i32 = arith.constant 2 : i32
    %1 = arith.addi %c2_i32, %arg1 : i32
    %c0_i32 = arith.constant 0 : i32
    return %arg0, %0, %1 : i32, i32, i32
  }
  func.func @transform_2(%arg0: i32, %arg1: i32, %arg2: i32, %arg3: i32) -> (i32, i32, i32) {
    %0 = arith.minsi %arg3, %arg2 : i32
    %c4_i32 = arith.constant 4 : i32
    %1 = arith.addi %c4_i32, %arg1 : i32
    %c0_i32 = arith.constant 0 : i32
    return %arg0, %0, %1 : i32, i32, i32
  }
  func.func @transform_3(%arg0: i32, %arg1: i32, %arg2: i32, %arg3: i32) -> (i32, i32) {
    %c0_i32 = arith.constant 0 : i32
    %c0_i32_0 = arith.constant 0 : i32
    return %arg2, %c0_i32 : i32, i32
  }
  func.func @transform_4(%arg0: i32, %arg1: i32, %arg2: i32, %arg3: i32) -> (i32, i32) {
    %c0_i32 = arith.constant 0 : i32
    %c0_i32_0 = arith.constant 0 : i32
    return %arg2, %c0_i32 : i32, i32
  }
  func.func @transform_5(%arg0: i32, %arg1: i32, %arg2: i32, %arg3: i32) -> (i32, i32) {
    %0 = arith.minsi %arg3, %arg2 : i32
    %c0_i32 = arith.constant 0 : i32
    %c0_i32_0 = arith.constant 0 : i32
    return %0, %c0_i32 : i32, i32
  }
  func.func @transform_6(%arg0: i32, %arg1: i32, %arg2: i32, %arg3: i32) -> (i32, i32) {
    %0 = arith.minsi %arg3, %arg2 : i32
    %c0_i32 = arith.constant 0 : i32
    %c0_i32_0 = arith.constant 0 : i32
    return %0, %c0_i32 : i32, i32
  }
  func.func @transform_7(%arg0: i32, %arg1: i32, %arg2: i32, %arg3: i32) -> (i32, i32, i32) {
    %c0_i32 = arith.constant 0 : i32
    return %arg0, %arg2, %arg1 : i32, i32, i32
  }
}

</mosaic_0001>

<bundles_post_ra>
// kernel: causal_self_attention.5
= control target key start
LH: loop header
LB: loop body
LE: loop exit
PB: predicated region body
PF: predicated region fallthrough
CT: control target
= control target key end

     0   :  { %7 = vsyncpa [#allocation4], 0  ;;  %s685_s0 = inlined_call_operand.vmem [shape: bf16[32,256], index: 0, kind: input, shape index: {}]   ;;  %s686_s1 = inlined_call_operand.hbm [shape: bf16[256,256], index: 1, kind: input, shape index: {}]   ;;  %s687_s2 = inlined_call_operand.hbm [shape: bf16[32,256], index: 2, kind: output, shape index: {}]  }
   0x1   :  { %8 = vsyncpa [#allocation5], 0  ;;  %s15_s11 = sshll.u32 %s686_s1, 4  ;;  %s630_s12 = smov [#allocation3]   ;;  %s16_s11 = int_to_ptr.hbm [resolvable:$true] %s15_s11 }
   0x2   :  { %s17_s13 = sshll.u32 %s630_s12, 4  ;;  %s631_s14 = smov 128   ;;  %s18_s13 = int_to_ptr.vmem [resolvable:$true] %s17_s13 }
   0x3   :  { %s632_s15 = smov 8  }
   0x4   :  { %23 = dma.hbm_to_vmem [thread:$0]  %s16_s11, 4096, %s18_s13, [#allocation4], %s631_s14, %s631_s14, %s632_s15  }
   0x5   :  { %626 = dma.done.wait [#allocation4], 4096  }
   0x6   :  { %627 = vsyncadd [#allocation4], 4294963200  ;;  %v468_v0 = vld [vmem:[#allocation3 + $0x70] sm:$0xf]  ;;  %v557_v1 = vld [vmem:[#allocation3 + $0x74] sm:$0xf0] }
   0x7   :  { %v532_v2 = vld [vmem:[#allocation3 + $0xf0] sm:$0xf]  ;;  %v469_v3 = vor.u32 %v557_v1, %v468_v0  ;;  %v573_v4 = vld [vmem:[#allocation3 + $0xf4] sm:$0xf0]  ;;  %v556_v5 = vld [vmem:[#allocation3 + $0x74] sm:$0xf] }
   0x8   :  { %v470_v6 = vld [vmem:[#allocation3 + $0x78] sm:$0xf0]  ;;  %v533_v7 = vor.u32 %v573_v4, %v532_v2  ;;  %v572_v9 = vld [vmem:[#allocation3 + $0xf4] sm:$0xf]  ;;  %v460_v11 = vld [vmem:[#allocation3 + $0x60] sm:$0xf] }
   0x9   :  { %v473_v8 = vor.u32 %v556_v5, %v470_v6  ;;  %v534_v10 = vld [vmem:[#allocation3 + $0xf8] sm:$0xf0]  ;;  %264 = vmatpush.bf16.msra.mxu0 %v469_v3  ;;  %v555_v13 = vld [vmem:[#allocation3 + $0x64] sm:$0xf0]  ;;  %v524_v14 = vld [vmem:[#allocation3 + $0xe0] sm:$0xf] }
   0xa   :  { %v537_v12 = vor.u32 %v572_v9, %v534_v10  ;;  %v571_v15 = vld [vmem:[#allocation3 + $0xe4] sm:$0xf0]  ;;  %283 = vmatpush.bf16.msra.mxu1 %v533_v7  ;;  %v461_v16 = vor.u32 %v555_v13, %v460_v11  ;;  %v554_v18 = vld [vmem:[#allocation3 + $0x64] sm:$0xf]  ;;  %v462_v19 = vld [vmem:[#allocation3 + $0x68] sm:$0xf0] }
   0xb   :  { %302 = vmatpush.bf16.msra.mxu2 %v473_v8  ;;  %v525_v17 = vor.u32 %v571_v15, %v524_v14  ;;  %v570_v20 = vld [vmem:[#allocation3 + $0xe4] sm:$0xf]  ;;  %v465_v21 = vor.u32 %v554_v18, %v462_v19  ;;  %v526_v22 = vld [vmem:[#allocation3 + $0xe8] sm:$0xf0]  ;;  %v452_v23 = vld [vmem:[#allocation3 + $0x50] sm:$0xf] }
   0xc   :  { %321 = vmatpush.bf16.msra.mxu3 %v537_v12  ;;  %v553_v24 = vld [vmem:[#allocation3 + $0x54] sm:$0xf0]  ;;  %v529_v25 = vor.u32 %v570_v20, %v526_v22  ;;  %v516_v26 = vld [vmem:[#allocation3 + $0xd0] sm:$0xf]  ;;  %v552_v28 = vld [vmem:[#allocation3 + $0x54] sm:$0xf] }
   0xd   :  { %v569_v27 = vld [vmem:[#allocation3 + $0xd4] sm:$0xf0]  ;;  %265 = vmatpush.bf16.msra.mxu0 %v461_v16  ;;  %v453_v29 = vor.u32 %v553_v24, %v452_v23  ;;  %v454_v30 = vld [vmem:[#allocation3 + $0x58] sm:$0xf0]  ;;  %v568_v31 = vld [vmem:[#allocation3 + $0xd4] sm:$0xf] }
   0xe   :  { %v518_v32 = vld [vmem:[#allocation3 + $0xd8] sm:$0xf0]  ;;  %284 = vmatpush.bf16.msra.mxu1 %v525_v17  ;;  %v517_v33 = vor.u32 %v569_v27, %v516_v26  ;;  %v457_v34 = vor.u32 %v552_v28, %v454_v30  ;;  %v444_v35 = vld [vmem:[#allocation3 + $0x40] sm:$0xf]  ;;  %v551_v36 = vld [vmem:[#allocation3 + $0x44] sm:$0xf0] }
   0xf   :  { %303 = vmatpush.bf16.msra.mxu2 %v465_v21  ;;  %v508_v37 = vld [vmem:[#allocation3 + $0xc0] sm:$0xf]  ;;  %v521_v38 = vor.u32 %v568_v31, %v518_v32  ;;  %v567_v39 = vld [vmem:[#allocation3 + $0xc4] sm:$0xf0]  ;;  %v550_v40 = vld [vmem:[#allocation3 + $0x44] sm:$0xf]  ;;  %v445_v44 = vor.u32 %v551_v36, %v444_v35 }
  0x10   :  { %322 = vmatpush.bf16.msra.mxu3 %v529_v25  ;;  %v446_v41 = vld [vmem:[#allocation3 + $0x48] sm:$0xf0]  ;;  %v566_v42 = vld [vmem:[#allocation3 + $0xc4] sm:$0xf]  ;;  %v509_v45 = vor.u32 %v567_v39, %v508_v37  ;;  %v436_v47 = vld [vmem:[#allocation3 + $0x30] sm:$0xf] }
  0x11   :  { %v510_v43 = vld [vmem:[#allocation3 + $0xc8] sm:$0xf0]  ;;  %266 = vmatpush.bf16.msra.mxu0 %v453_v29  ;;  %v449_v46 = vor.u32 %v550_v40, %v446_v41  ;;  %v549_v48 = vld [vmem:[#allocation3 + $0x34] sm:$0xf0]  ;;  %v500_v49 = vld [vmem:[#allocation3 + $0xb0] sm:$0xf] }
  0x12   :  { %285 = vmatpush.bf16.msra.mxu1 %v517_v33  ;;  %v513_v50 = vor.u32 %v566_v42, %v510_v43  ;;  %v565_v51 = vld [vmem:[#allocation3 + $0xb4] sm:$0xf0]  ;;  %v548_v52 = vld [vmem:[#allocation3 + $0x34] sm:$0xf]  ;;  %v438_v53 = vld [vmem:[#allocation3 + $0x38] sm:$0xf0]  ;;  %v437_v56 = vor.u32 %v549_v48, %v436_v47 }
  0x13   :  { %304 = vmatpush.bf16.msra.mxu2 %v457_v34  ;;  %v564_v54 = vld [vmem:[#allocation3 + $0xb4] sm:$0xf]  ;;  %v502_v55 = vld [vmem:[#allocation3 + $0xb8] sm:$0xf0]  ;;  %v501_v57 = vor.u32 %v565_v51, %v500_v49  ;;  %v441_v58 = vor.u32 %v548_v52, %v438_v53  ;;  %v428_v59 = vld [vmem:[#allocation3 + $0x20] sm:$0xf] }
  0x14   :  { %323 = vmatpush.bf16.msra.mxu3 %v521_v38  ;;  %v547_v60 = vld [vmem:[#allocation3 + $0x24] sm:$0xf0]  ;;  %v492_v61 = vld [vmem:[#allocation3 + $0xa0] sm:$0xf]  ;;  %v505_v62 = vor.u32 %v564_v54, %v502_v55  ;;  %v546_v0 = vld [vmem:[#allocation3 + $0x24] sm:$0xf] }
  0x15   :  { %267 = vmatpush.bf16.msra.mxu0 %v445_v44  ;;  %v563_v63 = vld [vmem:[#allocation3 + $0xa4] sm:$0xf0]  ;;  %v430_v1 = vld [vmem:[#allocation3 + $0x28] sm:$0xf0]  ;;  %v562_v2 = vld [vmem:[#allocation3 + $0xa4] sm:$0xf]  ;;  %v429_v4 = vor.u32 %v547_v60, %v428_v59 }
  0x16   :  { %286 = vmatpush.bf16.msra.mxu1 %v509_v45  ;;  %v494_v3 = vld [vmem:[#allocation3 + $0xa8] sm:$0xf0]  ;;  %v493_v5 = vor.u32 %v563_v63, %v492_v61  ;;  %v433_v6 = vor.u32 %v546_v0, %v430_v1  ;;  %v420_v7 = vld [vmem:[#allocation3 + $0x10] sm:$0xf]  ;;  %v545_v8 = vld [vmem:[#allocation3 + $0x14] sm:$0xf0] }
  0x17   :  { %305 = vmatpush.bf16.msra.mxu2 %v449_v46  ;;  %v484_v9 = vld [vmem:[#allocation3 + $0x90] sm:$0xf]  ;;  %v497_v10 = vor.u32 %v562_v2, %v494_v3  ;;  %v561_v11 = vld [vmem:[#allocation3 + $0x94] sm:$0xf0]  ;;  %v544_v12 = vld [vmem:[#allocation3 + $0x14] sm:$0xf]  ;;  %v421_v16 = vor.u32 %v545_v8, %v420_v7 }
  0x18   :  { %324 = vmatpush.bf16.msra.mxu3 %v513_v50  ;;  %v422_v13 = vld [vmem:[#allocation3 + $0x18] sm:$0xf0]  ;;  %v560_v14 = vld [vmem:[#allocation3 + $0x94] sm:$0xf]  ;;  %v485_v17 = vor.u32 %v561_v11, %v484_v9  ;;  %v412_v19 = vld [vmem:[#allocation3] sm:$0xf] }
  0x19   :  { %268 = vmatpush.bf16.msra.mxu0 %v437_v56  ;;  %v486_v15 = vld [vmem:[#allocation3 + $0x98] sm:$0xf0]  ;;  %v425_v18 = vor.u32 %v544_v12, %v422_v13  ;;  %v543_v20 = vld [vmem:[#allocation3 + $0x4] sm:$0xf0]  ;;  %v476_v21 = vld [vmem:[#allocation3 + $0x80] sm:$0xf] }
  0x1a   :  { %287 = vmatpush.bf16.msra.mxu1 %v501_v57  ;;  %v489_v22 = vor.u32 %v560_v14, %v486_v15  ;;  %v559_v23 = vld [vmem:[#allocation3 + $0x84] sm:$0xf0]  ;;  %v542_v24 = vld [vmem:[#allocation3 + $0x4] sm:$0xf]  ;;  %v414_v25 = vld [vmem:[#allocation3 + $0x8] sm:$0xf0]  ;;  %v413_v28 = vor.u32 %v543_v20, %v412_v19 }
  0x1b   :  { %306 = vmatpush.bf16.msra.mxu2 %v441_v58  ;;  %v558_v26 = vld [vmem:[#allocation3 + $0x84] sm:$0xf]  ;;  %v478_v27 = vld [vmem:[#allocation3 + $0x88] sm:$0xf0]  ;;  %v396_v29 = vld [vmem:[%s685_s0] sm:$0xf]  ;;  %v477_v31 = vor.u32 %v559_v23, %v476_v21  ;;  %v417_v32 = vor.u32 %v542_v24, %v414_v25 }
  0x1c   :  { %325 = vmatpush.bf16.msra.mxu3 %v505_v62  ;;  %v539_v30 = vld [vmem:[%s685_s0 + $0x4] sm:$0xf0]  ;;  %v538_v33 = vld [vmem:[%s685_s0 + $0x4] sm:$0xf]  ;;  %v398_v34 = vld [vmem:[%s685_s0 + $0x8] sm:$0xf0]  ;;  %v481_v35 = vor.u32 %v558_v26, %v478_v27 }
  0x1d   :  { %269 = vmatpush.bf16.msra.mxu0 %v429_v4  ;;  %v397_v36 = vor.u32 %v539_v30, %v396_v29  ;;  %v401_v37 = vor.u32 %v538_v33, %v398_v34  ;;  %v404_v38 = vld [vmem:[%s685_s0 + $0x10] sm:$0xf]  ;;  %v541_v39 = vld [vmem:[%s685_s0 + $0x14] sm:$0xf0]  ;;  %v540_v40 = vld [vmem:[%s685_s0 + $0x14] sm:$0xf] }
  0x1e   :  { %288 = vmatpush.bf16.msra.mxu1 %v493_v5  ;;  %v406_v41 = vld [vmem:[%s685_s0 + $0x18] sm:$0xf0]  ;;  %v405_v42 = vor.u32 %v541_v39, %v404_v38  ;;  %s633_s0 = smov [#allocation6]   ;;  %s381_s6 = sshll.u32 %s687_s2, 4  ;;  %s382_s6 = int_to_ptr.hbm [resolvable:$true] %s381_s6 }
  0x1f   :  { %307 = vmatpush.bf16.msra.mxu2 %v433_v6  ;;  %v409_v43 = vor.u32 %v540_v40, %v406_v41  ;;  %s379_s3 = sshll.u32 %s633_s0, 4  ;;  %s380_s3 = int_to_ptr.vmem [resolvable:$true] %s379_s3 }
  0x20   :  { %326 = vmatpush.bf16.msra.mxu3 %v497_v10 }
  0x21   :  { %270 = vmatpush.bf16.msra.mxu0 %v421_v16 }
  0x22   :  { %289 = vmatpush.bf16.msra.mxu1 %v485_v17 }
  0x23   :  { %308 = vmatpush.bf16.msra.mxu2 %v425_v18 }
  0x24   :  { %327 = vmatpush.bf16.msra.mxu3 %v489_v22 }
  0x25   :  { %271 = vmatpush.bf16.msra.mxu0 %v413_v28 }
  0x26   :  { %290 = vmatpush.bf16.msra.mxu1 %v477_v31 }
  0x27   :  { %309 = vmatpush.bf16.msra.mxu2 %v417_v32 }
  0x28   :  { %328 = vmatpush.bf16.msra.mxu3 %v481_v35  ;;  %272 = vmatmul.bf16.vlgmr.msra.gmra.mxu0 %v397_v36 }
  0x29   :  { %291 = vmatmul.bf16.vlgmr.msra.gmra.mxu1 %v401_v37 }
  0x2a   :  { %310 = vmatmul.bf16.vlgmr.msra.gmra.mxu2 %v397_v36 }
  0x2b   :  { %329 = vmatmul.bf16.vlgmr.msra.gmra.mxu3 %v401_v37 }
  0x38   :  { %277 = vmatmul.bf16.gmra.mxu0 %v405_v42 }
  0x39   :  { %296 = vmatmul.bf16.gmra.mxu1 %v409_v43 }
  0x3a   :  { %315 = vmatmul.bf16.gmra.mxu2 %v405_v42 }
  0x3b   :  { %334 = vmatmul.bf16.gmra.mxu3 %v409_v43 }
  0xa5   :  { %v273_v44 = vpop.f32.mrf.mxu0 }
  0xa6   :  { %v292_v45 = vpop.f32.mrf.mxu1 }
  0xa7   :  { %v293_v46 = vadd.f32 %v292_v45, %v273_v44 }
  0xad   :  { %v311_v47 = vpop.f32.mrf.mxu2  ;;  %v275_v50 = vpop.f32.mrf.mxu0 }
  0xae   :  { %v330_v48 = vpop.f32.mrf.mxu3  ;;  %v294_v51 = vpop.f32.mrf.mxu1 }
  0xaf   :  { %v331_v49 = vadd.f32 %v330_v48, %v311_v47  ;;  %v295_v55 = vadd.f32 %v294_v51, %v275_v50 }
  0xb1   :  { %v367_v52 = vpack.c.bf16 %v331_v49, %v293_v46 }
  0xb3   :  { %371 = vst [vmem:[#allocation6] sm:$0xff] %v367_v52 }
  0xb5   :  { %v313_v53 = vpop.f32.mrf.mxu2  ;;  %v278_v58 = vpop.f32.mrf.mxu0 }
  0xb6   :  { %v332_v54 = vpop.f32.mrf.mxu3  ;;  %v297_v59 = vpop.f32.mrf.mxu1 }
  0xb7   :  { %v333_v56 = vadd.f32 %v332_v54, %v313_v53  ;;  %v298_v60 = vadd.f32 %v297_v59, %v278_v58 }
  0xb9   :  { %v368_v57 = vpack.c.bf16 %v333_v56, %v295_v55 }
  0xbb   :  { %372 = vst [vmem:[#allocation6 + $0x8] sm:$0xff] %v368_v57 }
  0xbd   :  { %v316_v61 = vpop.f32.mrf.mxu2  ;;  %v280_v1 = vpop.f32.mrf.mxu0 }
  0xbe   :  { %v335_v62 = vpop.f32.mrf.mxu3  ;;  %v299_v2 = vpop.f32.mrf.mxu1 }
  0xbf   :  { %v336_v63 = vadd.f32 %v335_v62, %v316_v61  ;;  %v300_v5 = vadd.f32 %v299_v2, %v280_v1 }
  0xc1   :  { %v369_v0 = vpack.c.bf16 %v336_v63, %v298_v60 }
  0xc3   :  { %373 = vst [vmem:[#allocation6 + $0x10] sm:$0xff] %v369_v0 }
  0xc5   :  { %v318_v3 = vpop.f32.mrf.mxu2 }
  0xc6   :  { %v337_v4 = vpop.f32.mrf.mxu3 }
  0xc7   :  { %v338_v6 = vadd.f32 %v337_v4, %v318_v3 }
  0xc9   :  { %v370_v7 = vpack.c.bf16 %v338_v6, %v300_v5 }
  0xcb   :  { %374 = vst [vmem:[#allocation6 + $0x18] sm:$0xff] %v370_v7 }
  0xcc   :  { %387 = dma.vmem_to_hbm [thread:$0]  %s380_s3, 512, %s382_s6, [#allocation5], %s631_s14, %s631_s14, %s632_s15  }
  0xcd   :  { %628 = dma.done.wait [#allocation5], 512  }
  0xce   :  { %629 = vsyncadd [#allocation5], 4294966784 }
  0xcf   :  { %392 = vsyncpa [#allocation4], 1 }
  0xd0   :  { %393 = vsyncpa [#allocation5], 1 }

// kernel: causal_self_attention.3
= control target key start
LH: loop header
LB: loop body
LE: loop exit
PB: predicated region body
PF: predicated region fallthrough
CT: control target
= control target key end

     0   :  { %7 = vsyncpa [#allocation4], 0  ;;  %s1672_s0 = inlined_call_operand.hbm [shape: bf16[32,256], index: 0, kind: input, shape index: {}]   ;;  %s1673_s1 = inlined_call_operand.hbm [shape: bf16[256,768], index: 1, kind: input, shape index: {}]   ;;  %s1674_s2 = inlined_call_operand.vmem [shape: bf16[32,768], index: 2, kind: output, shape index: {}]  }
   0x1   :  { %8 = vsyncpa [#allocation6], 0 }
   0x2   :  { %10 = vsyncpa [#allocation6 + $0x1], 0  ;;  %s1425_s9 = smov 0   ;;  %s1427_s10 = smov 0  }
   0x3   :  { %s1429_s11 = smov 0   ;;  %s1431_s12 = smov 0  }
   0x4   :  { %s1433_s13 = smov 0   ;;  %s1435_s14 = smov 0  }
   0x5 LB: > { %s917_s15 = sadd.s32 4294967295, %s1402_s14   ;;  %p85_p0 = scmp.ne.s32.totalorder %s1386_s10, %s1382_s9  ;;  %s1402_s14 = sphi %s1435_s14, %s16_s14   ;;  %s1398_s13 = sphi %s1433_s13, %s1684_s13   ;;  %s1394_s12 = sphi %s1431_s12, %s1683_s12   ;;  %s1390_s11 = sphi %s1429_s11, %s1682_s11   ;;  %s1386_s10 = sphi %s1427_s10, %s1681_s10   ;;  %s1382_s9 = sphi %s1425_s9, %s1680_s9  }
   0x6   : > { %p1455_p1 = scmp.eq.s32.totalorder %s917_s15, 0  ;;  %p1459_p2 = scmp.eq.s32.totalorder %s917_s15, 1 }
   0x7   : > { %p919_p3 = scmp.ge.s32.totalorder %s1402_s14, 1  ;;  %p124_p4 = scmp.lt.s32.totalorder %s1402_s14, 3 }
   0x8   : > { %p1467_p5 = por %p1455_p1, %p85_p0  ;;  %s141_s22 = sshll.u32 %s1672_s0, 4  ;;  %s142_s22 = int_to_ptr.hbm [resolvable:$true] %s141_s22 }
   0x9   : > { %p1471_p6 = pnand %p919_p3, %p124_p4  ;;  %s1404_s23 = smov [#allocation3]  }
   0xa   : > { %s143_s24 = sshll.u32 %s1404_s23, 4  ;;  %s1405_s25 = smov 128   ;;  %s144_s24 = int_to_ptr.vmem [resolvable:$true] %s143_s24 }
   0xb   : > { %p1223_p7 = pneg %p1471_p6  ;;  %s1406_s26 = smov 8  }
   0xc   : > { %s31_s27 = sadd.s32 1, %s1398_s13  ;;  %s72_s28 = sadd.s32 1, %s1390_s11 }
   0xd   : > { %p1224_p8 = pnand %p1223_p7, %p1455_p1  ;;  %p33_p9 = scmp.ge.s32.totalorder %s31_s27, 2 }
   0xe   : > { %p79_p10 = scmp.ne.s32.totalorder %s1390_s11, %s1386_s10  ;;  %p80_p11 = scmp.eq.s32.totalorder %s1402_s14, 0 }
   0xf   : > { %1226 = dma.hbm_to_vmem [thread:$0]  (!%p1224_p8), %s142_s22, 512, %s144_s24, [#allocation4], %s1405_s25, %s1405_s25, %s1406_s26  }
  0x10   : > { %p1232_p12 = scmp.lt.s32.totalorder %s1402_s14, 2  ;;  %s1686_s27 = smov (%p33_p9, %s31_s27), 0 }
  0x11   : > { %p81_p13 = por %p80_p11, %p79_p10  ;;  %p1492_p0 = por %p1459_p2, %p79_p10 }
  0x12   : > { %s68_s30 = ssub.s32 %s1398_s13, %s1686_s27  ;;  %s157_s3 = sand.u32 1, %s1390_s11  }
  0x13   : > { %p70_p3 = scmp.eq.s32.totalorder %s68_s30, 0  ;;  %s1214_s4 = smul.u32 384, %s157_s3 }
  0x14   : > { %p1228_p4 = pnand %p1232_p12, %p81_p13  ;;  %s1144_s6 = smul.u32 12, %s1398_s13 }
  0x15   : > { %s1500_s5 = scalar_select %p70_p3, %s1390_s11, %s72_s28  }
  0x16   : > { %s161_s7 = scalar_lea.vmem [#allocation5], %s1214_s4  ;;  %s169_s20 = scalar_lea.hbm %s1673_s1, %s1144_s6 }
  0x17   : > { %s172_s8 = sshll.u32 %s161_s7, 4  ;;  %s170_s17 = sshll.u32 %s169_s20, 4  ;;  %s173_s8 = int_to_ptr.vmem [resolvable:$true] %s172_s8  ;;  %s171_s17 = int_to_ptr.hbm [resolvable:$true] %s170_s17 }
  0x18   : > { %s158_s21 = scalar_lea.sflag [#allocation6], %s157_s3  ;;  %s1407_s22 = smov 384  }
  0x19   : > { %s1408_s23 = smov 192   ;;  %s1409_s24 = smov 12  }
  0x1a   : > { %1230 = dma.hbm_to_vmem [thread:$0]  (!%p1228_p4), %s171_s17, 6144, %s173_s8, %s158_s21, %s1407_s22, %s1408_s23, %s1409_s24  }
  0x1b   : > { %184 = sbr.rel (%p1471_p6) target bundleno = 260 (0x104), region = 28 }
  0x20   : > { %1373 = dma.done.wait (%p1455_p1), [#allocation4], 512  }
  0x21   : > { %1375 = vsyncadd (%p1455_p1), [#allocation4], 4294966784  ;;  %s1513_s25 = sand.u32 1, %s1386_s10  }
  0x22   : > { %s1215_s26 = smul.u32 384, %s1513_s25  ;;  %s192_s28 = scalar_lea.sflag [#allocation6], %s1513_s25 }
  0x24   : > { %s1517_s30 = scalar_lea.vmem [#allocation5], %s1215_s26 }
  0x25   : > { %1377 = dma.done.wait (%p1467_p5), %s192_s28, 6144  }
  0x26   : > { %1379 = vsyncadd (%p1467_p5), %s192_s28, 4294961152  ;;  %v1027_v0 = vld [vmem:[%s1517_s30 + $0xa8] sm:$0xf]  ;;  %v1171_v1 = vld [vmem:[%s1517_s30 + $0xb0] sm:$0xf0]  ;;  %s1216_s16 = smul.u32 48, %s1513_s25 }
  0x27   : > { %v1123_v2 = vld [vmem:[%s1517_s30 + $0x168] sm:$0xf]  ;;  %v1028_v3 = vor.u32 %v1171_v1, %v1027_v0  ;;  %v1195_v4 = vld [vmem:[%s1517_s30 + $0x170] sm:$0xf0]  ;;  %v1170_v5 = vld [vmem:[%s1517_s30 + $0xac] sm:$0xf] }
  0x28   : > { %v1029_v6 = vld [vmem:[%s1517_s30 + $0xb4] sm:$0xf0]  ;;  %v1124_v7 = vor.u32 %v1195_v4, %v1123_v2  ;;  %v1194_v9 = vld [vmem:[%s1517_s30 + $0x16c] sm:$0xf]  ;;  %v1015_v11 = vld [vmem:[%s1517_s30 + $0x90] sm:$0xf] }
  0x29   : > { %v1032_v8 = vor.u32 %v1170_v5, %v1029_v6  ;;  %v1125_v10 = vld [vmem:[%s1517_s30 + $0x174] sm:$0xf0]  ;;  %594 = vmatpush.bf16.msra.mxu0 %v1028_v3  ;;  %v1168_v13 = vld [vmem:[%s1517_s30 + $0x98] sm:$0xf0]  ;;  %v1111_v14 = vld [vmem:[%s1517_s30 + $0x150] sm:$0xf] }
  0x2a   : > { %v1128_v12 = vor.u32 %v1194_v9, %v1125_v10  ;;  %v1192_v15 = vld [vmem:[%s1517_s30 + $0x158] sm:$0xf0]  ;;  %613 = vmatpush.bf16.msra.mxu1 %v1124_v7  ;;  %v1016_v16 = vor.u32 %v1168_v13, %v1015_v11  ;;  %v1167_v18 = vld [vmem:[%s1517_s30 + $0x94] sm:$0xf]  ;;  %v1017_v19 = vld [vmem:[%s1517_s30 + $0x9c] sm:$0xf0] }
  0x2b   : > { %632 = vmatpush.bf16.msra.mxu2 %v1032_v8  ;;  %v1112_v17 = vor.u32 %v1192_v15, %v1111_v14  ;;  %v1191_v20 = vld [vmem:[%s1517_s30 + $0x154] sm:$0xf]  ;;  %v1020_v21 = vor.u32 %v1167_v18, %v1017_v19  ;;  %v1113_v22 = vld [vmem:[%s1517_s30 + $0x15c] sm:$0xf0]  ;;  %v1003_v23 = vld [vmem:[%s1517_s30 + $0x78] sm:$0xf] }
  0x2c   : > { %651 = vmatpush.bf16.msra.mxu3 %v1128_v12  ;;  %v1165_v24 = vld [vmem:[%s1517_s30 + $0x80] sm:$0xf0]  ;;  %v1116_v25 = vor.u32 %v1191_v20, %v1113_v22  ;;  %v1099_v26 = vld [vmem:[%s1517_s30 + $0x138] sm:$0xf]  ;;  %v1164_v28 = vld [vmem:[%s1517_s30 + $0x7c] sm:$0xf] }
  0x2d   : > { %v1189_v27 = vld [vmem:[%s1517_s30 + $0x140] sm:$0xf0]  ;;  %595 = vmatpush.bf16.msra.mxu0 %v1016_v16  ;;  %v1004_v29 = vor.u32 %v1165_v24, %v1003_v23  ;;  %v1005_v30 = vld [vmem:[%s1517_s30 + $0x84] sm:$0xf0]  ;;  %v1188_v31 = vld [vmem:[%s1517_s30 + $0x13c] sm:$0xf] }
  0x2e   : > { %v1101_v32 = vld [vmem:[%s1517_s30 + $0x144] sm:$0xf0]  ;;  %614 = vmatpush.bf16.msra.mxu1 %v1112_v17  ;;  %v1100_v33 = vor.u32 %v1189_v27, %v1099_v26  ;;  %v1008_v34 = vor.u32 %v1164_v28, %v1005_v30  ;;  %v991_v35 = vld [vmem:[%s1517_s30 + $0x60] sm:$0xf]  ;;  %v1162_v36 = vld [vmem:[%s1517_s30 + $0x68] sm:$0xf0] }
  0x2f   : > { %633 = vmatpush.bf16.msra.mxu2 %v1020_v21  ;;  %v1087_v37 = vld [vmem:[%s1517_s30 + $0x120] sm:$0xf]  ;;  %v1104_v38 = vor.u32 %v1188_v31, %v1101_v32  ;;  %v1186_v39 = vld [vmem:[%s1517_s30 + $0x128] sm:$0xf0]  ;;  %v1161_v40 = vld [vmem:[%s1517_s30 + $0x64] sm:$0xf]  ;;  %v992_v44 = vor.u32 %v1162_v36, %v991_v35 }
  0x30   : > { %652 = vmatpush.bf16.msra.mxu3 %v1116_v25  ;;  %v993_v41 = vld [vmem:[%s1517_s30 + $0x6c] sm:$0xf0]  ;;  %v1185_v42 = vld [vmem:[%s1517_s30 + $0x124] sm:$0xf]  ;;  %v1088_v45 = vor.u32 %v1186_v39, %v1087_v37  ;;  %v979_v47 = vld [vmem:[%s1517_s30 + $0x48] sm:$0xf] }
  0x31   : > { %v1089_v43 = vld [vmem:[%s1517_s30 + $0x12c] sm:$0xf0]  ;;  %596 = vmatpush.bf16.msra.mxu0 %v1004_v29  ;;  %v996_v46 = vor.u32 %v1161_v40, %v993_v41  ;;  %v1159_v48 = vld [vmem:[%s1517_s30 + $0x50] sm:$0xf0]  ;;  %v1075_v49 = vld [vmem:[%s1517_s30 + $0x108] sm:$0xf] }
  0x32   : > { %615 = vmatpush.bf16.msra.mxu1 %v1100_v33  ;;  %v1092_v50 = vor.u32 %v1185_v42, %v1089_v43  ;;  %v1183_v51 = vld [vmem:[%s1517_s30 + $0x110] sm:$0xf0]  ;;  %v1158_v52 = vld [vmem:[%s1517_s30 + $0x4c] sm:$0xf]  ;;  %v981_v53 = vld [vmem:[%s1517_s30 + $0x54] sm:$0xf0]  ;;  %v980_v56 = vor.u32 %v1159_v48, %v979_v47 }
  0x33   : > { %634 = vmatpush.bf16.msra.mxu2 %v1008_v34  ;;  %v1182_v54 = vld [vmem:[%s1517_s30 + $0x10c] sm:$0xf]  ;;  %v1077_v55 = vld [vmem:[%s1517_s30 + $0x114] sm:$0xf0]  ;;  %v1076_v57 = vor.u32 %v1183_v51, %v1075_v49  ;;  %v984_v58 = vor.u32 %v1158_v52, %v981_v53  ;;  %v967_v59 = vld [vmem:[%s1517_s30 + $0x30] sm:$0xf] }
  0x34   : > { %653 = vmatpush.bf16.msra.mxu3 %v1104_v38  ;;  %v1156_v60 = vld [vmem:[%s1517_s30 + $0x38] sm:$0xf0]  ;;  %v1063_v61 = vld [vmem:[%s1517_s30 + $0xf0] sm:$0xf]  ;;  %v1080_v62 = vor.u32 %v1182_v54, %v1077_v55  ;;  %v1155_v0 = vld [vmem:[%s1517_s30 + $0x34] sm:$0xf] }
  0x35   : > { %597 = vmatpush.bf16.msra.mxu0 %v992_v44  ;;  %v1180_v63 = vld [vmem:[%s1517_s30 + $0xf8] sm:$0xf0]  ;;  %v969_v1 = vld [vmem:[%s1517_s30 + $0x3c] sm:$0xf0]  ;;  %v1179_v2 = vld [vmem:[%s1517_s30 + $0xf4] sm:$0xf]  ;;  %v968_v4 = vor.u32 %v1156_v60, %v967_v59 }
  0x36   : > { %616 = vmatpush.bf16.msra.mxu1 %v1088_v45  ;;  %v1065_v3 = vld [vmem:[%s1517_s30 + $0xfc] sm:$0xf0]  ;;  %v1064_v5 = vor.u32 %v1180_v63, %v1063_v61  ;;  %v972_v6 = vor.u32 %v1155_v0, %v969_v1  ;;  %v955_v7 = vld [vmem:[%s1517_s30 + $0x18] sm:$0xf]  ;;  %v1153_v8 = vld [vmem:[%s1517_s30 + $0x20] sm:$0xf0] }
  0x37   : > { %635 = vmatpush.bf16.msra.mxu2 %v996_v46  ;;  %v1051_v9 = vld [vmem:[%s1517_s30 + $0xd8] sm:$0xf]  ;;  %v1068_v10 = vor.u32 %v1179_v2, %v1065_v3  ;;  %v1177_v11 = vld [vmem:[%s1517_s30 + $0xe0] sm:$0xf0]  ;;  %v1152_v12 = vld [vmem:[%s1517_s30 + $0x1c] sm:$0xf]  ;;  %v956_v16 = vor.u32 %v1153_v8, %v955_v7 }
  0x38   : > { %654 = vmatpush.bf16.msra.mxu3 %v1092_v50  ;;  %v957_v13 = vld [vmem:[%s1517_s30 + $0x24] sm:$0xf0]  ;;  %v1176_v14 = vld [vmem:[%s1517_s30 + $0xdc] sm:$0xf]  ;;  %v943_v17 = vld [vmem:[%s1517_s30] sm:$0xf]  ;;  %v1052_v19 = vor.u32 %v1177_v11, %v1051_v9 }
  0x39   : > { %598 = vmatpush.bf16.msra.mxu0 %v980_v56  ;;  %v1053_v15 = vld [vmem:[%s1517_s30 + $0xe4] sm:$0xf0]  ;;  %v1150_v18 = vld [vmem:[%s1517_s30 + $0x8] sm:$0xf0]  ;;  %v960_v20 = vor.u32 %v1152_v12, %v957_v13  ;;  %v1039_v21 = vld [vmem:[%s1517_s30 + $0xc0] sm:$0xf] }
  0x3a   : > { %617 = vmatpush.bf16.msra.mxu1 %v1076_v57  ;;  %v1174_v22 = vld [vmem:[%s1517_s30 + $0xc8] sm:$0xf0]  ;;  %v1149_v23 = vld [vmem:[%s1517_s30 + $0x4] sm:$0xf]  ;;  %v1056_v24 = vor.u32 %v1176_v14, %v1053_v15  ;;  %v945_v25 = vld [vmem:[%s1517_s30 + $0xc] sm:$0xf0]  ;;  %v944_v31 = vor.u32 %v1150_v18, %v943_v17 }
  0x3b   : > { %636 = vmatpush.bf16.msra.mxu2 %v984_v58  ;;  %v1173_v26 = vld [vmem:[%s1517_s30 + $0xc4] sm:$0xf]  ;;  %v1041_v27 = vld [vmem:[%s1517_s30 + $0xcc] sm:$0xf0]  ;;  %v927_v28 = vld [vmem:[#allocation3] sm:$0xf]  ;;  %v1040_v35 = vor.u32 %v1174_v22, %v1039_v21  ;;  %v948_v36 = vor.u32 %v1149_v23, %v945_v25 }
  0x3c   : > { %655 = vmatpush.bf16.msra.mxu3 %v1080_v62  ;;  %v1035_v29 = vld [vmem:[%s1517_s30 + $0xb0] sm:$0xf]  ;;  %v1172_v30 = vld [vmem:[%s1517_s30 + $0xb8] sm:$0xf0]  ;;  %v1146_v32 = vld [vmem:[#allocation3 + $0x4] sm:$0xf0]  ;;  %v1044_v39 = vor.u32 %v1173_v26, %v1041_v27 }
  0x3d   : > { %599 = vmatpush.bf16.msra.mxu0 %v968_v4  ;;  %v1131_v33 = vld [vmem:[%s1517_s30 + $0x170] sm:$0xf]  ;;  %v1196_v34 = vld [vmem:[%s1517_s30 + $0x178] sm:$0xf0]  ;;  %v1145_v37 = vld [vmem:[#allocation3 + $0x4] sm:$0xf]  ;;  %v1036_v40 = vor.u32 %v1172_v30, %v1035_v29  ;;  %v1591_v41 = vor.u32 %v1146_v32, %v927_v28 }
  0x3e   : > { %618 = vmatpush.bf16.msra.mxu1 %v1064_v5  ;;  %v929_v38 = vld [vmem:[#allocation3 + $0x8] sm:$0xf0]  ;;  %v1132_v42 = vor.u32 %v1196_v34, %v1131_v33  ;;  %v1023_v43 = vld [vmem:[%s1517_s30 + $0x98] sm:$0xf]  ;;  %v1169_v44 = vld [vmem:[%s1517_s30 + $0xa0] sm:$0xf0] }
  0x3f   : > { %637 = vmatpush.bf16.msra.mxu2 %v972_v6  ;;  %v1595_v45 = vor.u32 %v1145_v37, %v929_v38  ;;  %v1119_v46 = vld [vmem:[%s1517_s30 + $0x158] sm:$0xf]  ;;  %v1193_v47 = vld [vmem:[%s1517_s30 + $0x160] sm:$0xf0]  ;;  %v1024_v48 = vor.u32 %v1169_v44, %v1023_v43  ;;  %v1011_v50 = vld [vmem:[%s1517_s30 + $0x80] sm:$0xf] }
  0x40   : > { %656 = vmatpush.bf16.msra.mxu3 %v1068_v10  ;;  %v1120_v49 = vor.u32 %v1193_v47, %v1119_v46  ;;  %v1166_v51 = vld [vmem:[%s1517_s30 + $0x88] sm:$0xf0]  ;;  %v1107_v52 = vld [vmem:[%s1517_s30 + $0x140] sm:$0xf]  ;;  %v999_v56 = vld [vmem:[%s1517_s30 + $0x68] sm:$0xf] }
  0x41   : > { %600 = vmatpush.bf16.msra.mxu0 %v956_v16  ;;  %v1190_v53 = vld [vmem:[%s1517_s30 + $0x148] sm:$0xf0]  ;;  %v1012_v54 = vor.u32 %v1166_v51, %v1011_v50  ;;  %v1163_v57 = vld [vmem:[%s1517_s30 + $0x70] sm:$0xf0]  ;;  %v1095_v58 = vld [vmem:[%s1517_s30 + $0x128] sm:$0xf] }
  0x42   : > { %619 = vmatpush.bf16.msra.mxu1 %v1052_v19  ;;  %v1108_v55 = vor.u32 %v1190_v53, %v1107_v52  ;;  %v1187_v59 = vld [vmem:[%s1517_s30 + $0x130] sm:$0xf0]  ;;  %v1000_v60 = vor.u32 %v1163_v57, %v999_v56  ;;  %v935_v62 = vld [vmem:[#allocation3 + $0x10] sm:$0xf]  ;;  %v1160_v0 = vld [vmem:[%s1517_s30 + $0x58] sm:$0xf0] }
  0x43   : > { %638 = vmatpush.bf16.msra.mxu2 %v960_v20  ;;  %v1096_v61 = vor.u32 %v1187_v59, %v1095_v58  ;;  %v987_v63 = vld [vmem:[%s1517_s30 + $0x50] sm:$0xf]  ;;  %v1148_v1 = vld [vmem:[#allocation3 + $0x14] sm:$0xf0]  ;;  %v1184_v3 = vld [vmem:[%s1517_s30 + $0x118] sm:$0xf0] }
  0x44   : > { %657 = vmatpush.bf16.msra.mxu3 %v1056_v24  ;;  %v1083_v2 = vld [vmem:[%s1517_s30 + $0x110] sm:$0xf]  ;;  %v1147_v4 = vld [vmem:[#allocation3 + $0x14] sm:$0xf]  ;;  %v937_v5 = vld [vmem:[#allocation3 + $0x18] sm:$0xf0]  ;;  %v988_v6 = vor.u32 %v1160_v0, %v987_v63  ;;  %v936_v7 = vor.u32 %v1148_v1, %v935_v62 }
  0x45   : > { %601 = vmatpush.bf16.msra.mxu0 %v944_v31  ;;  %v1084_v8 = vor.u32 %v1184_v3, %v1083_v2  ;;  %v975_v9 = vld [vmem:[%s1517_s30 + $0x38] sm:$0xf]  ;;  %v1157_v10 = vld [vmem:[%s1517_s30 + $0x40] sm:$0xf0]  ;;  %v940_v11 = vor.u32 %v1147_v4, %v937_v5  ;;  %v963_v16 = vld [vmem:[%s1517_s30 + $0x20] sm:$0xf] }
  0x46   : > { %620 = vmatpush.bf16.msra.mxu1 %v1040_v35  ;;  %v1071_v12 = vld [vmem:[%s1517_s30 + $0xf8] sm:$0xf]  ;;  %v1181_v13 = vld [vmem:[%s1517_s30 + $0x100] sm:$0xf0]  ;;  %v976_v14 = vor.u32 %v1157_v10, %v975_v9  ;;  %v1154_v17 = vld [vmem:[%s1517_s30 + $0x28] sm:$0xf0] }
  0x47   : > { %639 = vmatpush.bf16.msra.mxu2 %v948_v36  ;;  %v1072_v15 = vor.u32 %v1181_v13, %v1071_v12  ;;  %v1059_v18 = vld [vmem:[%s1517_s30 + $0xe0] sm:$0xf]  ;;  %v1178_v19 = vld [vmem:[%s1517_s30 + $0xe8] sm:$0xf0]  ;;  %v964_v20 = vor.u32 %v1154_v17, %v963_v16  ;;  %v951_v22 = vld [vmem:[%s1517_s30 + $0x8] sm:$0xf] }
  0x48   : > { %658 = vmatpush.bf16.msra.mxu3 %v1044_v39  ;;  %602 = vmatmul.bf16.vlgmr.msra.gmra.mxu0 %v1591_v41  ;;  %v1060_v21 = vor.u32 %v1178_v19, %v1059_v18  ;;  %v1151_v23 = vld [vmem:[%s1517_s30 + $0x10] sm:$0xf0]  ;;  %v1047_v24 = vld [vmem:[%s1517_s30 + $0xc8] sm:$0xf]  ;;  %s1630_s18 = scalar_lea.vmem [#allocation7], %s1216_s16  ;;  %s1197_s19 = smul.u32 (%p1492_p0), 12, %s1394_s12 }
  0x49   : > { %621 = vmatmul.bf16.vlgmr.msra.gmra.mxu1 %v1595_v45  ;;  %670 = vmatpush.bf16.msrb.mxu0 %v1036_v40  ;;  %v1175_v25 = vld [vmem:[%s1517_s30 + $0xd0] sm:$0xf0]  ;;  %v952_v26 = vor.u32 %v1151_v23, %v951_v22 }
  0x4a   : > { %640 = vmatmul.bf16.vlgmr.msra.gmra.mxu2 %v1591_v41  ;;  %689 = vmatpush.bf16.msrb.mxu1 %v1132_v42  ;;  %v1048_v27 = vor.u32 %v1175_v25, %v1047_v24  ;;  %s775_s6 = scalar_lea.vmem (%p1492_p0), %s1674_s2, %s1197_s19 }
  0x4b   : > { %1198 = vmatpush.bf16.msrb.mxu2 %v1036_v40  ;;  %659 = vmatmul.bf16.vlgmr.msra.gmra.mxu3 %v1595_v45 }
  0x4c   : > { %1206 = vmatpush.bf16.msrb.mxu3 %v1132_v42 }
  0x4d   : > { %671 = vmatpush.bf16.msrb.mxu0 %v1024_v48 }
  0x4e   : > { %690 = vmatpush.bf16.msrb.mxu1 %v1120_v49 }
  0x4f   : > { %1199 = vmatpush.bf16.msrb.mxu2 %v1024_v48 }
  0x50   : > { %1207 = vmatpush.bf16.msrb.mxu3 %v1120_v49 }
  0x51   : > { %672 = vmatpush.bf16.msrb.mxu0 %v1012_v54 }
  0x52   : > { %691 = vmatpush.bf16.msrb.mxu1 %v1108_v55 }
  0x53   : > { %1200 = vmatpush.bf16.msrb.mxu2 %v1012_v54 }
  0x54   : > { %1208 = vmatpush.bf16.msrb.mxu3 %v1108_v55 }
  0x55   : > { %673 = vmatpush.bf16.msrb.mxu0 %v1000_v60 }
  0x56   : > { %692 = vmatpush.bf16.msrb.mxu1 %v1096_v61 }
  0x57   : > { %1201 = vmatpush.bf16.msrb.mxu2 %v1000_v60 }
  0x58   : > { %1209 = vmatpush.bf16.msrb.mxu3 %v1096_v61  ;;  %607 = vmatmul.bf16.gmra.mxu0 %v936_v7 }
  0x59   : > { %626 = vmatmul.bf16.gmra.mxu1 %v940_v11  ;;  %674 = vmatpush.bf16.msrb.mxu0 %v988_v6 }
  0x5a   : > { %645 = vmatmul.bf16.gmra.mxu2 %v936_v7  ;;  %693 = vmatpush.bf16.msrb.mxu1 %v1084_v8 }
  0x5b   : > { %1202 = vmatpush.bf16.msrb.mxu2 %v988_v6  ;;  %664 = vmatmul.bf16.gmra.mxu3 %v940_v11 }
  0x5c   : > { %1210 = vmatpush.bf16.msrb.mxu3 %v1084_v8 }
  0x5d   : > { %675 = vmatpush.bf16.msrb.mxu0 %v976_v14 }
  0x5e   : > { %694 = vmatpush.bf16.msrb.mxu1 %v1072_v15 }
  0x5f   : > { %1203 = vmatpush.bf16.msrb.mxu2 %v976_v14 }
  0x60   : > { %1211 = vmatpush.bf16.msrb.mxu3 %v1072_v15 }
  0x61   : > { %676 = vmatpush.bf16.msrb.mxu0 %v964_v20 }
  0x62   : > { %695 = vmatpush.bf16.msrb.mxu1 %v1060_v21 }
  0x63   : > { %1204 = vmatpush.bf16.msrb.mxu2 %v964_v20 }
  0x64   : > { %1212 = vmatpush.bf16.msrb.mxu3 %v1060_v21 }
  0x65   : > { %677 = vmatpush.bf16.msrb.mxu0 %v952_v26 }
  0x66   : > { %696 = vmatpush.bf16.msrb.mxu1 %v1048_v27 }
  0x67   : > { %1205 = vmatpush.bf16.msrb.mxu2 %v952_v26 }
  0x68   : > { %1213 = vmatpush.bf16.msrb.mxu3 %v1048_v27  ;;  %678 = vmatmul.bf16.vlgmr.msrb.gmra.mxu0 %v1591_v41 }
  0x69   : > { %697 = vmatmul.bf16.vlgmr.msrb.gmra.mxu1 %v1595_v45 }
  0x6a   : > { %683 = vmatmul.bf16.vlgmr.msrb.gmra.mxu2 %v936_v7 }
  0x6b   : > { %702 = vmatmul.bf16.vlgmr.msrb.gmra.mxu3 %v940_v11 }
  0xc5   : > { %v603_v28 = vpop.f32.mrf.mxu0 }
  0xc6   : > { %v622_v29 = vpop.f32.mrf.mxu1 }
  0xc7   : > { %v623_v30 = vadd.f32 %v622_v29, %v603_v28 }
  0xcd   : > { %v641_v31 = vpop.f32.mrf.mxu2  ;;  %v605_v33 = vpop.f32.mrf.mxu0 }
  0xce   : > { %v660_v32 = vpop.f32.mrf.mxu3  ;;  %v624_v35 = vpop.f32.mrf.mxu1 }
  0xcf   : > { %v661_v34 = vadd.f32 %v660_v32, %v641_v31  ;;  %v625_v40 = vadd.f32 %v624_v35, %v605_v33 }
  0xd1   : > { %v747_v36 = vpack.c.bf16 %v661_v34, %v623_v30 }
  0xd3   : > { %755 = vst [vmem:[%s1630_s18] sm:$0xff] %v747_v36 }
  0xd5   : > { %v643_v37 = vpop.f32.mrf.mxu2  ;;  %v608_v39 = vpop.f32.mrf.mxu0 }
  0xd6   : > { %v662_v38 = vpop.f32.mrf.mxu3  ;;  %v627_v42 = vpop.f32.mrf.mxu1 }
  0xd7   : > { %v663_v41 = vadd.f32 %v662_v38, %v643_v37  ;;  %v628_v44 = vadd.f32 %v627_v42, %v608_v39 }
  0xd9   : > { %v749_v43 = vpack.c.bf16 %v663_v41, %v625_v40 }
  0xda   : > { %v790_v8 = vld [vmem:[%s1630_s18] sm:$0xff] (%p1492_p0) }
  0xdb   : > { %757 = vst [vmem:[%s1630_s18 + $0xc] sm:$0xff] %v749_v43 }
  0xdc   : > { %791 = vst [vmem:[%s775_s6] sm:$0xff] (%p1492_p0), %v790_v8 }
  0xdd   : > { %v646_v45 = vpop.f32.mrf.mxu2  ;;  %v610_v47 = vpop.f32.mrf.mxu0 }
  0xde   : > { %v665_v46 = vpop.f32.mrf.mxu3  ;;  %v629_v49 = vpop.f32.mrf.mxu1 }
  0xdf   : > { %v666_v48 = vadd.f32 %v665_v46, %v646_v45  ;;  %v630_v53 = vadd.f32 %v629_v49, %v610_v47 }
  0xe1   : > { %v751_v50 = vpack.c.bf16 %v666_v48, %v628_v44 }
  0xe2   : > { %v792_v9 = vld [vmem:[%s1630_s18 + $0xc] sm:$0xff] (%p1492_p0) }
  0xe3   : > { %759 = vst [vmem:[%s1630_s18 + $0x18] sm:$0xff] %v751_v50 }
  0xe4   : > { %793 = vst [vmem:[%s775_s6 + $0x18] sm:$0xff] (%p1492_p0), %v792_v9 }
  0xe5   : > { %v648_v51 = vpop.f32.mrf.mxu2  ;;  %v679_v55 = vpop.f32.mrf.mxu0 }
  0xe6   : > { %v667_v52 = vpop.f32.mrf.mxu3  ;;  %v698_v56 = vpop.f32.mrf.mxu1 }
  0xe7   : > { %v668_v54 = vadd.f32 %v667_v52, %v648_v51  ;;  %v699_v58 = vadd.f32 %v698_v56, %v679_v55 }
  0xe9   : > { %v753_v57 = vpack.c.bf16 %v668_v54, %v630_v53  ;;  %v748_v59 = vpack.c.bf16 %v699_v58, %v699_v58 }
  0xea   : > { %v794_v10 = vld [vmem:[%s1630_s18 + $0x18] sm:$0xff] (%p1492_p0) }
  0xeb   : > { %761 = vst [vmem:[%s1630_s18 + $0x24] sm:$0xff] %v753_v57 }
  0xec   : > { %756 = vst [vmem:[%s1630_s18 + $0x8] sm:$0xf] %v748_v59 }
  0xed   : > { %v684_v60 = vpop.f32.mrf.mxu2  ;;  %v681_v63 = vpop.f32.mrf.mxu0  ;;  %795 = vst [vmem:[%s775_s6 + $0x30] sm:$0xff] (%p1492_p0), %v794_v10 }
  0xee   : > { %v703_v61 = vpop.f32.mrf.mxu3  ;;  %v700_v0 = vpop.f32.mrf.mxu1 }
  0xef   : > { %v704_v62 = vadd.f32 %v703_v61, %v684_v60  ;;  %v701_v2 = vadd.f32 %v700_v0, %v681_v63 }
  0xf1   : > { %v752_v1 = vpack.c.bf16 %v704_v62, %v704_v62  ;;  %v750_v3 = vpack.c.bf16 %v701_v2, %v701_v2 }
  0xf2   : > { %v796_v11 = vld [vmem:[%s1630_s18 + $0x24] sm:$0xff] (%p1492_p0) }
  0xf3   : > { %760 = vst [vmem:[%s1630_s18 + $0x20] sm:$0xf] %v752_v1  ;;  %v1134_v12 = vld [vmem:[%s1630_s18 + $0x8] sm:$0xf] (%p1492_p0) }
  0xf4   : > { %758 = vst [vmem:[%s1630_s18 + $0x14] sm:$0xf] %v750_v3 }
  0xf5   : > { %v686_v4 = vpop.f32.mrf.mxu2  ;;  %797 = vst [vmem:[%s775_s6 + $0x48] sm:$0xff] (%p1492_p0), %v796_v11 }
  0xf6   : > { %v705_v5 = vpop.f32.mrf.mxu3  ;;  %1135 = vst [vmem:[%s775_s6 + $0x8] sm:$0xf] (%p1492_p0), %v1134_v12 }
  0xf7   : > { %v706_v6 = vadd.f32 %v705_v5, %v686_v4  ;;  %769 = sbr.rel (!%p1492_p0) target bundleno = 260 (0x104), region = 48 }
  0xf9   : > { %v754_v7 = vpack.c.bf16 %v706_v6, %v706_v6 }
  0xfa   : > { %v1138_v14 = vld [vmem:[%s1630_s18 + $0x20] sm:$0xf] (%p1492_p0) }
  0xfb   : > { %762 = vst [vmem:[%s1630_s18 + $0x2c] sm:$0xf] %v754_v7  ;;  %v1136_v13 = vld [vmem:[%s1630_s18 + $0x14] sm:$0xf] (%p1492_p0) }
  0xfc   : > { %1137 = vst [vmem:[%s775_s6 + $0x20] sm:$0xf] %v1136_v13 }
  0xfd   : > { %1139 = vst [vmem:[%s775_s6 + $0x38] sm:$0xf] %v1138_v14 }
 0x102   : > { %v1140_v15 = vld [vmem:[%s1630_s18 + $0x2c] sm:$0xf] }
 0x103   : > { %1141 = vst [vmem:[%s775_s6 + $0x50] sm:$0xf] %v1140_v15 }
 0x104 PF: > { %s16_s14 = sadd.s32 1, %s1402_s14   ;;  %s1680_s9 = smov %s1386_s10 }
 0x105   : > { %p13_p1 = scmp.ge.s32.totalorder %s16_s14, 4   ;;  %s1681_s10 = smov %s1390_s11 }
 0x106   : > { %s1682_s11 = smov %s1500_s5  ;;  %s1683_s12 = smov %s1398_s13 }
 0x107   : > { %s1684_s13 = smov %s1686_s27  ;;  %15 = sbr.rel (!%p13_p1) target bundleno = 5 (0x5), region = 114 }
 0x10c   :  { %829 = vsyncpa [#allocation4], 1 }
 0x10d   :  { %831 = vsyncpa [#allocation4 + $0x1], 1 }
 0x10e   :  { %832 = vsyncpa [#allocation6], 1 }
 0x10f   :  { %834 = vsyncpa [#allocation6 + $0x1], 1 }

// kernel: causal_self_attention.4
= control target key start
LH: loop header
LB: loop body
LE: loop exit
PB: predicated region body
PF: predicated region fallthrough
CT: control target
= control target key end

     0   :  { %s1971_s0 = inlined_call_operand.vmem [shape: bf16[2,16,768], index: 0, kind: input, shape index: {}, may-alias: {0,1,2}]   ;;  %s1972_s1 = inlined_call_operand.vmem [shape: bf16[2,16,768], index: 1, kind: input, shape index: {}, may-alias: {0,1,2}]   ;;  %s1973_s2 = inlined_call_operand.vmem [shape: bf16[2,16,768], index: 2, kind: input, shape index: {}, may-alias: {0,1,2}]   ;;  %s1974_s3 = inlined_call_operand.hbm [shape: f32[16,128], index: 3, kind: input, shape index: {}, may-alias: {3,5}]   ;;  %s1975_s4 = inlined_call_operand.hbm [shape: f32[16,128], index: 4, kind: input, shape index: {}, may-alias: {4,6}]   ;;  %s1976_s5 = inlined_call_operand.hbm [shape: f32[16,128], index: 5, kind: input, shape index: {}, may-alias: {3,5}]   ;;  %s1977_s6 = inlined_call_operand.hbm [shape: f32[16,128], index: 6, kind: input, shape index: {}, may-alias: {4,6}]   ;;  %s1978_s7 = inlined_call_operand.vmem [shape: bf16[2,16,256], index: 7, kind: output, shape index: {}]  }
   0x1   :  { %1988 = sst [smem:[#allocation33_spill]] %s1975_s4 }
   0x2   :  { %1989 = sst [smem:[#allocation34_spill]] %s1978_s7 }
   0x3   :  { %12 = vsyncpa [#allocation10], 0 }
   0x4   :  { %13 = vsyncpa [#allocation12], 0 }
   0x5   :  { %14 = vsyncpa [#allocation15], 0  ;;  %s1709_s24 = smov 0   ;;  %s1711_s25 = smov 0  }
   0x6   :  { %s1713_s26 = smov 0   ;;  %s1715_s27 = smov 0  }
   0x7   :  { %s1717_s28 = smov 0   ;;  %s1719_s29 = smov 0  }
   0x8   :  { %s1721_s30 = smov 0   ;;  %s1723_s8 = smov 0  }
   0x9   :  { %s1725_s9 = smov 0   ;;  %s1727_s10 = smov 0  }
   0xa   :  { %s1729_s11 = smov 0  }
   0xb LB: > { %1990 = sst [smem:[#allocation20_spill]] %s1620_s24  ;;  %s42_s13 = sadd.s32 1, %s1652_s9  ;;  %s1660_s11 = sphi %s1729_s11, %s20_s11   ;;  %s1656_s10 = sphi %s1727_s10, %s2038_s10   ;;  %s1652_s9 = sphi %s1725_s9, %s2037_s9   ;;  %s1648_s8 = sphi %s1723_s8, %s2036_s8   ;;  %s1644_s30 = sphi %s1721_s30, %s2035_s30   ;;  %s1640_s29 = sphi %s1719_s29, %s2034_s29   ;;  %s1636_s28 = sphi %s1717_s28, %s2033_s28   ;;  %s1632_s27 = sphi %s1715_s27, %s2032_s27   ;;  %s1628_s26 = sphi %s1713_s26, %s2031_s26   ;;  %s1624_s25 = sphi %s1711_s25, %s2030_s25   ;;  %s1620_s24 = sphi %s1709_s24, %s2029_s24  }
   0xc   : > { %1991 = sst [smem:[#allocation21_spill]] %s1628_s26  ;;  %p44_p0 = scmp.ge.s32.totalorder %s42_s13, 2 }
   0xd   : > { %1992 = sst [smem:[#allocation22_spill]] %s1636_s28  ;;  %s46_s14 = sadd.s32 1, %s1656_s10 }
   0xe   : > { %1993 = sst [smem:[#allocation23_spill]] %s1644_s30  ;;  %s57_s15 = sadd.s32 1, %s1640_s29 }
   0xf   : > { %1994 = sst [smem:[#allocation24_spill]] %s1648_s8  ;;  %p64_p1 = scmp.ne.s32.totalorder %s1640_s29, %s1636_s28 }
  0x10   : > { %s2040_s13 = smov (%p44_p0, %s42_s13), 0  ;;  %s2042_s14 = smov (!%p44_p0, %s46_s14), %s1656_s10 }
  0x11   : > { %1995 = sst [smem:[#allocation25_spill]] %s2040_s13  ;;  %s53_s16 = ssub.s32 %s1652_s9, %s2040_s13 }
  0x12   : > { %p65_p2 = scmp.eq.s32.totalorder %s1660_s11, 0  ;;  %p48_p3 = scmp.ge.s32.totalorder %s2042_s14, 2 }
  0x13   : > { %s82_s17 = sadd.s32 2, %s1652_s9  ;;  %s85_s19 = sadd.s32 2, %s2040_s13 }
  0x14   : > { %p1782_p4 = por %p65_p2, %p64_p1  ;;  %s2044_s14 = smov (%p48_p3, %s2042_s14), 0 }
  0x15   : > { %1997 = sst [smem:[#allocation26_spill]] %s2044_s14  ;;  %s89_s20 = ssub.s32 %s82_s17, %s85_s19 }
  0x16   : > { %s93_s21 = sadd.s32 1, %s1632_s27  ;;  %s50_s22 = ssub.s32 %s1656_s10, %s2044_s14 }
  0x17   : > { %p100_p5 = scmp.ne.s32.totalorder %s1632_s27, %s1628_s26  ;;  %s54_s23 = sor.u32 %s53_s16, %s50_s22 }
  0x18   : > { %s90_s12 = sor.u32 %s89_s20, %s50_s22  ;;  %p55_p6 = scmp.eq.s32.totalorder %s54_s23, 0 }
  0x19   : > { %p91_p7 = scmp.eq.s32.totalorder %s90_s12, 0  ;;  %p1796_p8 = por %p100_p5, %p65_p2 }
  0x1a   : > { %s118_s17 = sadd.s32 4, %s1652_s9  ;;  %s121_s16 = sadd.s32 4, %s2040_s13 }
  0x1b   : > { %s1802_s19 = scalar_select %p55_p6, %s1640_s29, %s57_s15  }
  0x1c   : > { %s1805_s14 = scalar_select %p91_p7, %s1632_s27, %s93_s21  }
  0x1d   : > { %1999 = sst [smem:[#allocation27_spill]] %s1802_s19  ;;  %s129_s30 = sadd.s32 1, %s1624_s25 }
  0x1e   : > { %2000 = sst [smem:[#allocation28_spill]] %s1805_s14  ;;  %s125_s8 = ssub.s32 %s118_s17, %s121_s16 }
  0x1f   : > { %p136_p9 = scmp.ne.s32.totalorder %s1624_s25, %s1620_s24  ;;  %s126_s20 = sor.u32 %s125_s8, %s50_s22 }
  0x20   : > { %s2001_s23 = sadd.s32 4294967295, %s1660_s11   ;;  %p127_p11 = scmp.eq.s32.totalorder %s126_s20, 0 }
  0x21   : > { %p282_p10 = scmp.eq.s32.totalorder %s2001_s23, 3  ;;  %p1815_p12 = por %p136_p9, %p65_p2 }
  0x22   : > { %p1217_p0 = scmp.ge.s32.totalorder %s1660_s11, 1  ;;  %p295_p3 = scmp.lt.s32.totalorder %s1660_s11, 5 }
  0x23   : > { %p1822_p13 = por %p282_p10, %p64_p1  ;;  %s2006_s21 = smov %s2001_s23 }
  0x24   : > { %s1828_s15 = scalar_select %p127_p11, %s1624_s25, %s129_s30  }
  0x25   : > { %s2003_s26 = scalar_select %p1822_p13, 1, 0 }
  0x26   : > { %2005 = sst [smem:[#allocation30_spill]] %s1828_s15  ;;  %p1833_p5 = scmp.eq.s32.totalorder %s2006_s21, 0 }
  0x27   : > { %2004 = sst [smem:[#allocation29_spill]] %s2003_s26  ;;  %p1837_p6 = pnand %p1217_p0, %p295_p3 }
  0x28   : > { %s2007_s8 = scalar_select %p1833_p5, 1, 0 }
  0x29   : > { %s2009_s22 = scalar_select %p1837_p6, 1, 0 }
  0x2a   : > { %2008 = sst [smem:[#allocation31_spill]] %s2007_s8  ;;  %p1304_p1 = pneg %p1837_p6 }
  0x2b   : > { %2010 = sst [smem:[#allocation32_spill]] %s2009_s22  ;;  %s1662_s30 = smov [#allocation11]  }
  0x2c   : > { %s2011_s4 = sld [smem:[#allocation33_spill]]  ;;  %s328_s23 = sshll.u32 %s1662_s30, 4  ;;  %s329_s23 = int_to_ptr.vmem [resolvable:$true] %s328_s23 }
  0x2d   : > { %p1848_p2 = pnand %p1833_p5, %p1304_p1  ;;  %s1663_s13 = smov 128  }
  0x2e   : > { %s1664_s19 = smov 8   ;;  %s1665_s30 = smov [#allocation9]  }
  0x2f   : > { %s311_s14 = sshll.u32 %s1665_s30, 4  ;;  %s345_s8 = sshll.u32 %s1976_s5, 4  ;;  %s312_s14 = int_to_ptr.vmem [resolvable:$true] %s311_s14  ;;  %s346_s8 = int_to_ptr.hbm [resolvable:$true] %s345_s8 }
  0x30   : > { %s1666_s24 = smov [#allocation13]   ;;  %s1667_s17 = smov [#allocation14]  }
  0x31   : > { %s347_s28 = sshll.u32 %s1666_s24, 4  ;;  %s366_s16 = sshll.u32 %s1667_s17, 4  ;;  %s348_s28 = int_to_ptr.vmem [resolvable:$true] %s347_s28  ;;  %s367_s16 = int_to_ptr.vmem [resolvable:$true] %s366_s16 }
  0x32   : > { %s326_s20 = sshll.u32 %s2011_s4, 4  ;;  %s309_s4 = sshll.u32 %s1974_s3, 4  ;;  %s327_s20 = int_to_ptr.hbm [resolvable:$true] %s326_s20  ;;  %s310_s4 = int_to_ptr.hbm [resolvable:$true] %s309_s4 }
  0x33   : > { %1310 = dma.hbm_to_vmem [thread:$0]  (!%p1848_p2), %s327_s20, 256, %s329_s23, [#allocation12], %s1663_s13, %s1663_s13, %s1664_s19  }
  0x34   : > { %1307 = dma.hbm_to_vmem [thread:$0]  (!%p1848_p2), %s310_s4, 256, %s312_s14, [#allocation10], %s1663_s13, %s1663_s13, %s1664_s19  }
  0x35   : > { %s364_s23 = sshll.u32 %s1977_s6, 4  ;;  %p1222_p7 = scmp.ge.s32.totalorder %s1660_s11, 4  ;;  %s365_s23 = int_to_ptr.hbm [resolvable:$true] %s364_s23 }
  0x36   : > { %1313 = dma.hbm_to_vmem [thread:$0]  (!%p1848_p2), %s346_s8, 256, %s348_s28, [#allocation12], %s1663_s13, %s1663_s13, %s1664_s19  }
  0x37   : > { %1316 = dma.hbm_to_vmem [thread:$0]  (!%p1848_p2), %s365_s23, 256, %s367_s16, [#allocation15], %s1663_s13, %s1663_s13, %s1664_s19  }
  0x38   : > { %376 = sbr.rel (%p1222_p7) target bundleno = 88 (0x58), region = 32 }
  0x3d   : > { %379 = sbr.rel (!%p1782_p4) target bundleno = 70 (0x46), region = 36  ;;  %s381_s4 = sand.u32 (%p1782_p4), 1, %s1640_s29  }
  0x3e   : > { %s1287_s24 = smul.u32 (%p1782_p4), 12, %s1656_s10  ;;  %s1223_s26 = sshll.u32 (%p1782_p4), %s381_s4, 3 }
  0x3f   : > { %s383_s13 = scalar_lea.vmem (%p1782_p4), [#allocation6], %s1223_s26 }
  0x40   : > { %s388_s14 = sadd.s32 (%p1782_p4), %s1652_s9, %s1287_s24 }
  0x41   : > { %s1224_s28 = sshll.u32 (%p1782_p4), %s388_s14, 2 }
  0x42   : > { %s390_s22 = scalar_lea.vmem %s1971_s0, %s1224_s28 }
  0x43   : > { %v407_v0 = vld [vmem:[%s390_s22] sm:$0xf]  ;;  %v409_v1 = vld [vmem:[%s390_s22 + $0x18] sm:$0xf] }
  0x44   : > { %408 = vst [vmem:[%s383_s13] sm:$0xf] %v407_v0 }
  0x45   : > { %410 = vst [vmem:[%s383_s13 + $0x4] sm:$0xf] %v409_v1 }
  0x46 PF: > { %438 = sbr.rel (!%p1796_p8) target bundleno = 79 (0x4f), region = 77  ;;  %s440_s18 = sand.u32 (%p1796_p8), 1, %s1632_s27  }
  0x47   : > { %s1075_s19 = smul.u32 (%p1796_p8), 12, %s1656_s10  ;;  %s1225_s21 = sshll.u32 (%p1796_p8), %s440_s18, 3 }
  0x48   : > { %s442_s4 = scalar_lea.vmem (%p1796_p8), [#allocation7], %s1225_s21 }
  0x49   : > { %s1076_s30 = sadd.s32 (%p1796_p8), %s1652_s9, %s1075_s19 }
  0x4a   : > { %s1226_s20 = sshll.u32 (%p1796_p8), %s1076_s30, 2 }
  0x4b   : > { %s1078_s16 = scalar_lea.vmem %s1972_s1, %s1226_s20 }
  0x4c   : > { %v1227_v2 = vld [vmem:[%s1078_s16 + $0x8] sm:$0xf]  ;;  %v1228_v3 = vld [vmem:[%s1078_s16 + $0x20] sm:$0xf] }
  0x4d   : > { %470 = vst [vmem:[%s442_s4] sm:$0xf] %v1227_v2 }
  0x4e   : > { %472 = vst [vmem:[%s442_s4 + $0x4] sm:$0xf] %v1228_v3 }
  0x4f PF: > { %500 = sbr.rel (!%p1815_p12) target bundleno = 88 (0x58), region = 118  ;;  %s502_s7 = sand.u32 (%p1815_p12), 1, %s1624_s25  }
  0x50   : > { %s1084_s24 = smul.u32 (%p1815_p12), 12, %s1656_s10  ;;  %s1229_s26 = sshll.u32 (%p1815_p12), %s502_s7, 3 }
  0x51   : > { %s504_s13 = scalar_lea.vmem (%p1815_p12), [#allocation8], %s1229_s26 }
  0x52   : > { %s1085_s14 = sadd.s32 (%p1815_p12), %s1652_s9, %s1084_s24 }
  0x53   : > { %s1230_s28 = sshll.u32 (%p1815_p12), %s1085_s14, 2 }
  0x54   : > { %s1087_s22 = scalar_lea.vmem %s1973_s2, %s1230_s28 }
  0x55   : > { %v1231_v4 = vld [vmem:[%s1087_s22 + $0x10] sm:$0xf]  ;;  %v1232_v5 = vld [vmem:[%s1087_s22 + $0x28] sm:$0xf] }
  0x56   : > { %532 = vst [vmem:[%s504_s13] sm:$0xf] %v1231_v4 }
  0x57   : > { %534 = vst [vmem:[%s504_s13 + $0x4] sm:$0xf] %v1232_v5 }
  0x58 PF: > { %565 = sbr.rel (%p1837_p6) target bundleno = 664 (0x298), region = 159  ;;  %s2014_s18 = sld [smem:[#allocation22_spill]] (!%p1837_p6) }
  0x59   : > { %s2015_s19 = sld [smem:[#allocation21_spill]] (!%p1837_p6) }
  0x5a   : > { %s2016_s21 = sld [smem:[#allocation20_spill]] (!%p1837_p6) }
  0x5e   : > { %s568_s20 = sand.u32 1, %s2014_s18  }
  0x5f   : > { %s575_s23 = sand.u32 1, %s2015_s19   ;;  %s1898_s17 = sshll.u32 %s568_s20, 3 }
  0x60   : > { %s1235_s16 = sshll.u32 %s575_s23, 3  ;;  %s582_s4 = sand.u32 1, %s2016_s21  }
  0x61   : > { %s1901_s7 = sshll.u32 %s582_s4, 3  ;;  %s570_s24 = scalar_lea.vmem [#allocation6], %s1898_s17 }
  0x62   : > { %s577_s26 = scalar_lea.vmem [#allocation7], %s1235_s16  ;;  %s584_s14 = scalar_lea.vmem [#allocation8], %s1901_s7 }
  0x63   : > { %1607 = dma.done.wait (%p1833_p5), [#allocation10], 256  }
  0x64   : > { %1609 = vsyncadd (%p1833_p5), [#allocation10], 4294967040 }
  0x65   : > { %1611 = dma.done.wait (%p1833_p5), [#allocation12], 512  }
  0x66   : > { %1613 = vsyncadd (%p1833_p5), [#allocation12], 4294966784 }
  0x67   : > { %1615 = dma.done.wait (%p1833_p5), [#allocation15], 256  }
  0x68   : > { %1617 = vsyncadd (%p1833_p5), [#allocation15], 4294967040  ;;  %v1270_v6 = vld [vmem:[%s570_s24] sm:$0xff]   ;;  %v1279_v9 = vld [vmem:[%s577_s26] sm:$0xff]   ;;  %s1668_s28 = smov 64   ;;  %v856_v45 = vlaneseq  ;;  %vm867_vm1 = vcmask 130048  }
  0x69   : > { %v1271_v7 = vunpack.c.l.bf16 %v1270_v6  ;;  %v1272_v8 = vunpack.c.h.bf16 %v1270_v6  ;;  %v1280_v11 = vunpack.c.l.bf16 %v1279_v9  ;;  %v1281_v12 = vunpack.c.h.bf16 %v1279_v9  ;;  %v671_v14 = vld [vmem:[#allocation9] sm:$0xff]  ;;  %v672_v15 = vld [vmem:[#allocation9 + $0x8] sm:$0xff]  ;;  %v673_v16 = vld [vmem:[#allocation11] sm:$0xff]  ;;  %s639_s15 = scalar_lea.vmem [#allocation16], %s1898_s17  ;;  %s2021_s22 = sld [smem:[#allocation24_spill]] (%p1822_p13) }
  0x6a   : > { %v674_v17 = vld [vmem:[#allocation11 + $0x8] sm:$0xff]  ;;  %v817_v27 = vld [vmem:[#allocation13] sm:$0xff]  ;;  %v818_v28 = vld [vmem:[#allocation13 + $0x8] sm:$0xff]  ;;  %v857_v46 = vshrl.u32 %v856_v45, 7  ;;  %v860_v47 = vand.u32 127, %v856_v45  ;;  %s2022_s13 = sld [smem:[#allocation23_spill]] (%p1822_p13) }
  0x6b   : > { %v1420_v10 = vpack.i.bf16 %v1272_v8, %v1271_v7  ;;  %v1425_v13 = vpack.i.bf16 %v1281_v12, %v1280_v11  ;;  %v678_v19 = vmul.f32 %v1272_v8, %v672_v15  ;;  %v677_v20 = vmul.f32 %v1271_v7, %v671_v14  ;;  %v819_v31 = vld [vmem:[#allocation14] sm:$0xff]  ;;  %v820_v32 = vld [vmem:[#allocation14 + $0x8] sm:$0xff]  ;;  %s2023_s20 = sld [smem:[#allocation34_spill]] (%p1822_p13) }
  0x6c   : > { %v823_v34 = vmul.f32 %v1280_v11, %v817_v27  ;;  %v824_v38 = vmul.f32 %v1281_v12, %v818_v28  ;;  %vm861_vm0 = vcmp.ge.s32.totalorder %v857_v46, %v860_v47  ;;  %v858_v51 = vadd.s32 8, %v857_v46  ;;  %v1268_v55 = vld [vmem:[%s584_s14] sm:$0xff] }
  0x6d   : > { %1421 = vrot.lane.b32.xlu0 %v1420_v10, %s1668_s28  ;;  %925 = vmatpush.bf16.msra.mxu1 %v1268_v55 }
  0x6e   : > { %vm862_vm2 = vcmp.ge.s32.totalorder %v858_v51, %v860_v47 }
  0x6f   : > { %s1261_s12 = sshll.u32 (%p1822_p13), %s2021_s22, 2 }
  0x70   : > { %s990_s18 = sadd.s32 (%p1822_p13), %s2022_s13, %s1261_s12 }
  0x71   : > { %s1262_s19 = sshll.u32 (%p1822_p13), %s990_s18, 2 }
  0x72   : > { %s992_s23 = scalar_lea.vmem (%p1822_p13), %s2023_s20, %s1262_s19 }
  0x75   : > { %1426 = vrot.lane.b32.xlu0 %v1425_v13, %s1668_s28 }
  0xdf   : > { %v1422_v18 = vpop.permute.xlu0 %1421 }
  0xe0   : > { %v1424_v21 = vunpack.i.h.bf16 %v1422_v18  ;;  %v1423_v22 = vunpack.i.l.bf16 %v1422_v18 }
  0xe2   : > { %v684_v23 = vmul.f32 %v1424_v21, %v674_v17  ;;  %v683_v24 = vmul.f32 %v1423_v22, %v673_v16 }
  0xe4   : > { %v686_v25 = vadd.f32 %v684_v23, %v678_v19  ;;  %v685_v26 = vadd.f32 %v683_v24, %v677_v20 }
  0xe6   : > { %v688_v29 = vmul.f32 0.088388346, %v686_v25  ;;  %v687_v30 = vmul.f32 0.088388346, %v685_v26 }
  0xe7   : > { %v1427_v33 = vpop.permute.xlu0 %1426 }
  0xe8   : > { %v1276_v35 = vpack.c.bf16 %v688_v29, %v687_v30  ;;  %v1429_v36 = vunpack.i.h.bf16 %v1427_v33  ;;  %v1428_v37 = vunpack.i.l.bf16 %v1427_v33 }
  0xea   : > { %1277 = vst [vmem:[#allocation5] sm:$0xff] %v1276_v35   ;;  %v830_v39 = vmul.f32 %v1429_v36, %v820_v32  ;;  %v829_v40 = vmul.f32 %v1428_v37, %v819_v31 }
  0xec   : > { %v831_v41 = vadd.f32 %v829_v40, %v823_v34  ;;  %v832_v42 = vadd.f32 %v830_v39, %v824_v38 }
  0xee   : > { %v833_v43 = vpack.c.bf16 %v832_v42, %v831_v41 }
  0xf0   : > { %849 = vmatpush.bf16.xpose.msra.mxu0 %v833_v43 }
  0xf1   : > { %v1267_v44 = vld [vmem:[#allocation5] sm:$0xff] }
  0xf7   : > { %850 = vmatmul.bf16.vlgmr.msra.gmra.mxu0 %v1267_v44 }
 0x174   : > { %v851_v48 = vpop.f32.mrf.mxu0 }
 0x175   : > { %v863_v49 = vsel %vm861_vm0, %v851_v48, -1e+30 }
 0x176   : > { %v868_v50 = vsel %vm867_vm1, %v863_v49, -inf }
 0x177   : > { %869 = vmax.xlane.f32.xlu1 %v868_v50 }
 0x17c   : > { %v853_v52 = vpop.f32.mrf.mxu0 }
 0x17d   : > { %v864_v53 = vsel %vm862_vm2, %v853_v52, -1e+30 }
 0x17e   : > { %v871_v54 = vsel %vm867_vm1, %v864_v53, -inf }
 0x17f   : > { %872 = vmax.xlane.f32.xlu1 %v871_v54 }
 0x1ea   : > { %v870_v56 = vpop.xlane.xlu1 %869 }
 0x1eb   : > { %v874_v57 = vmax.f32 %v870_v56, -1e+30 }
 0x1ed   : > { %v882_v58 = vsub.f32 %v863_v49, %v874_v57  ;;  %v876_v5 = vsub.f32 -1e+30, %v874_v57 }
 0x1ef   : > { %v884_v59 = vmul.f32 1.442695, %v882_v58  ;;  %v878_v6 = vmul.f32 1.442695, %v876_v5 }
 0x1f1   : > { %1430 = vpow2.f32 %v884_v59 }
 0x1f2   : > { %v873_v60 = vpop.xlane.xlu1 %872 }
 0x1f3   : > { %v875_v61 = vmax.f32 %v873_v60, -1e+30 }
 0x1f5   : > { %v883_v62 = vsub.f32 %v864_v53, %v875_v61  ;;  %v877_v7 = vsub.f32 -1e+30, %v875_v61 }
 0x1f7   : > { %v886_v63 = vmul.f32 1.442695, %v883_v62  ;;  %v1431_v0 = vpop.eup %1430  ;;  %v880_v8 = vmul.f32 1.442695, %v877_v7 }
 0x1f8   : > { %v892_v1 = vsel %vm867_vm1, %v1431_v0, 0.0 }
 0x1f9   : > { %1432 = vpow2.f32 %v886_v63  ;;  %893 = vadd.xlane.f32.xlu2 %v892_v1 }
 0x1fa   : > { %1434 = vpow2.f32 %v878_v6 }
 0x1fb   : > { %1436 = vpow2.f32 %v880_v8 }
 0x1ff   : > { %v1433_v2 = vpop.eup %1432 }
 0x200   : > { %v895_v3 = vsel %vm867_vm1, %v1433_v2, 0.0  ;;  %v906_v4 = vpack.c.bf16 %v1433_v2, %v1431_v0  ;;  %v1435_v9 = vpop.eup %1434 }
 0x201   : > { %896 = vadd.xlane.f32.xlu2 %v895_v3  ;;  %v890_v10 = vmul.f32 0.0, %v1435_v9  ;;  %v1437_v13 = vpop.eup %1436 }
 0x202   : > { %1259 = vmatmul.msk.bf16.vlgmr.msra.gmra.mxu1 %vm867_vm1, %v906_v4  ;;  %v891_v14 = vmul.f32 0.0, %v1437_v13 }
 0x26c   : > { %v894_v11 = vpop.xlane.xlu2 %893 }
 0x26d   : > { %v898_v12 = vadd.f32 %v894_v11, %v890_v10 }
 0x26f   : > { %1438 = vrcp.f32 %v898_v12  ;;  %vm948_vm5 = vweird.f32 %v898_v12  ;;  %v954_v27 = vand.u32 2147483648, %v898_v12  ;;  %v952_v30 = vand.u32 2147483647, %v898_v12 }
 0x271   : > { %v955_v36 = vor.u32 1.1754944e-38, %v954_v27  ;;  %vm953_vm9 = vcmp.eq.f32.partialorder %v952_v30, 8.507059e+37 }
 0x274   : > { %v897_v15 = vpop.xlane.xlu2 %896 }
 0x275   : > { %v1439_v16 = vpop.eup %1438  ;;  %v899_v17 = vadd.f32 %v897_v15, %v891_v14 }
 0x276   : > { %v944_v18 = vmul.f32 %v1439_v16, %v898_v12  ;;  %vm949_vm3 = vweird.f32 %v1439_v16 }
 0x277   : > { %1440 = vrcp.f32 %v899_v17  ;;  %v968_v28 = vand.u32 2147483648, %v899_v17  ;;  %vm1924_vm6 = vmor %vm948_vm5, %vm949_vm3  ;;  %vm962_vm7 = vweird.f32 %v899_v17  ;;  %v966_v32 = vand.u32 2147483647, %v899_v17 }
 0x278   : > { %v945_v19 = vsub.f32 1.0, %v944_v18 }
 0x279   : > { %v969_v38 = vor.u32 1.1754944e-38, %v968_v28  ;;  %vm967_vm10 = vcmp.eq.f32.partialorder %v966_v32, 8.507059e+37 }
 0x27a   : > { %v946_v22 = vmul.f32 %v1439_v16, %v945_v19 }
 0x27c   : > { %v947_v25 = vadd.f32 %v1439_v16, %v946_v22 }
 0x27d   : > { %v1441_v20 = vpop.eup %1440 }
 0x27e   : > { %v958_v21 = vmul.f32 %v1441_v20, %v899_v17  ;;  %vm963_vm4 = vweird.f32 %v1441_v20  ;;  %v951_v34 = vsel %vm1924_vm6, %v1439_v16, %v947_v25 }
 0x27f   : > { %v927_v23 = vpop.f32.mrf.mxu1  ;;  %vm964_vm8 = vmor %vm962_vm7, %vm963_vm4  ;;  %v956_v40 = vsel %vm953_vm9, %v955_v36, %v951_v34 }
 0x280   : > { %v959_v24 = vsub.f32 1.0, %v958_v21  ;;  %v932_v33 = vadd.f32 %v927_v23, %v890_v10 }
 0x282   : > { %v960_v26 = vmul.f32 %v1441_v20, %v959_v24  ;;  %v973_v42 = vmul.f32 %v956_v40, %v932_v33 }
 0x284   : > { %v961_v31 = vadd.f32 %v1441_v20, %v960_v26 }
 0x286   : > { %v965_v35 = vsel %vm964_vm8, %v1441_v20, %v961_v31 }
 0x287   : > { %v929_v37 = vpop.f32.mrf.mxu1  ;;  %v970_v41 = vsel %vm967_vm10, %v969_v38, %v965_v35 }
 0x288   : > { %v933_v39 = vadd.f32 %v929_v37, %v891_v14 }
 0x28a   : > { %v974_v43 = vmul.f32 %v970_v41, %v933_v39  ;;  %985 = sbr.rel (!%p1822_p13) target bundleno = 664 (0x298), region = 207 }
 0x28c   : > { %v1285_v44 = vpack.c.bf16 %v974_v43, %v973_v42 }
 0x28e   : > { %1286 = vst [vmem:[%s639_s15] sm:$0xff] %v1285_v44  }
 0x295   : > { %v1009_v45 = vld [vmem:[%s639_s15] sm:$0xf]  ;;  %v1011_v46 = vld [vmem:[%s639_s15 + $0x4] sm:$0xf] }
 0x296   : > { %1010 = vst [vmem:[%s992_s23] sm:$0xf] %v1009_v45 }
 0x297   : > { %1012 = vst [vmem:[%s992_s23 + $0x8] sm:$0xf] %v1011_v46 }
 0x298 PF: > { %s20_s11 = sadd.s32 1, %s1660_s11   ;;  %s2024_s17 = sld [smem:[#allocation30_spill]] }
 0x299   : > { %p17_p4 = scmp.ge.s32.totalorder %s20_s11, 6   ;;  %s2025_s16 = sld [smem:[#allocation28_spill]] }
 0x29a   : > { %s2026_s4 = sld [smem:[#allocation27_spill]]  ;;  %s2029_s24 = smov %s1624_s25 }
 0x29b   : > { %s2027_s7 = sld [smem:[#allocation25_spill]]  ;;  %s2031_s26 = smov %s1632_s27 }
 0x29c   : > { %s2028_s14 = sld [smem:[#allocation26_spill]]  ;;  %s2033_s28 = smov %s1640_s29 }
 0x29d   : > { %s2035_s30 = smov %s1652_s9  ;;  %s2036_s8 = smov %s1656_s10 }
 0x29e   : > { %s2030_s25 = smov %s2024_s17  ;;  %19 = sbr.rel (!%p17_p4) target bundleno = 11 (0xb), region = 300 }
 0x29f   : > { %s2032_s27 = smov %s2025_s16 }
 0x2a0   : > { %s2034_s29 = smov %s2026_s4 }
 0x2a1   : > { %s2037_s9 = smov %s2027_s7 }
 0x2a2   : > { %s2038_s10 = smov %s2028_s14 }
 0x2a3   :  { %1050 = vsyncpa [#allocation10], 1 }
 0x2a4   :  { %1052 = vsyncpa [#allocation10 + $0x1], 1 }
 0x2a5   :  { %1053 = vsyncpa [#allocation12], 1 }
 0x2a6   :  { %1054 = vsyncpa [#allocation15], 1 }

</bundles_post_ra>
